<compile_context>
chip_gen: v5e
topology: v5e:2x2
jax: 0.10.0
libtpu: 0.0.40
codegen_flags: <defaults>
</compile_context>

<pallas_src>
import functools

import jax
import jax.numpy as jnp
from jax.experimental import pallas as pl
from jax.experimental.pallas import tpu as pltpu

_GUARD_ROWS = 16                   # scratch-slab guard rows so kw=+1/+2 taps never read OOB
_VMEM_BUDGET = 36 * 2**20          # per-step working-set target (v7x physical VMEM = 64 MiB)


def _round_up(x, m):
    return (x + m - 1) // m * m


# -----------------------------------------------------------------------------
# Fused direct-conv kernel: out = act( sum_{taps, cin-chunks} X_tap @ W_tap + b )
# -----------------------------------------------------------------------------
def _conv_kernel(xa_ref, xb_ref, w_ref, b_ref, o_ref, *scratch,
                 tap_offsets, m_tile, sub_m, n_sub, halo_flat,
                 relu, n_ci, need_slab):
    """One (batch, row-tile, Cout-tile, Cin-chunk) grid step of a stride-1 'same' conv.

    xa_ref : (1, m_tile, tci)    bf16  row tile of the flattened padded activation
    xb_ref : (1, halo_flat, tci) bf16  2-image-row halo that follows the tile
    w_ref  : (KH*KW, tci, tco)   bf16
    b_ref  : (1, tco)            f32
    o_ref  : (1, m_tile, tco)
    scratch: [slab (sub_m+halo_flat+guard, tci) bf16]  when the conv has >1 tap
             [acc  (m_tile, tco) f32]                  when the Cin reduction is chunked
    """
    si = 0
    slab_ref = None
    if need_slab:
        slab_ref = scratch[si]
        si += 1
    acc_ref = scratch[si] if n_ci > 1 else None

    tail_base = m_tile - sub_m

    if need_slab:
        # Tail of the row tile + halo (+ zeroed guard) assembled once per step so every
        # tap window is a contiguous VMEM slice.  Row (kh) shifts are sublane-aligned
        # because Wp is a multiple of 16; only the kw = +/-1 shifts stay misaligned.
        slab_ref[:sub_m, :] = xa_ref[0, tail_base:, :]
        slab_ref[sub_m:sub_m + halo_flat, :] = xb_ref[0]
        slab_ref[sub_m + halo_flat:, :] = jnp.zeros(
            (slab_ref.shape[0] - sub_m - halo_flat, slab_ref.shape[1]),
            slab_ref.dtype)

    ci = pl.program_id(3)
    is_first = ci == 0
    is_last = ci == pl.num_programs(3) - 1

    for s in range(n_sub):                          # static unroll over M sub-tiles
        off = s * sub_m
        part = None
        for t_i, t_off in enumerate(tap_offsets):   # static unroll over <=9 taps
            start = off + t_off
            if start + sub_m <= m_tile:             # window fully inside the row tile
                a = xa_ref[0, start:start + sub_m, :]
            else:                                   # window runs into the halo slab
                a = slab_ref[start - tail_base:start - tail_base + sub_m, :]
            d = jnp.dot(a, w_ref[t_i], preferred_element_type=jnp.float32)
            part = d if part is None else part + d

        if n_ci == 1:                               # single Cin chunk: no accumulator
            out = part + b_ref[...]
            if relu:
                out = jnp.maximum(out, 0.0)
            o_ref[0, off:off + sub_m, :] = out.astype(o_ref.dtype)
        else:
            @pl.when(is_first)
            def _(part=part, off=off):
                acc_ref[off:off + sub_m, :] = part

            @pl.when(jnp.logical_and(jnp.logical_not(is_first),
                                     jnp.logical_not(is_last)))
            def _(part=part, off=off):
                acc_ref[off:off + sub_m, :] = acc_ref[off:off + sub_m, :] + part

            @pl.when(is_last)
            def _(part=part, off=off):
                out = acc_ref[off:off + sub_m, :] + part + b_ref[...]
                if relu:
                    out = jnp.maximum(out, 0.0)
                o_ref[0, off:off + sub_m, :] = out.astype(o_ref.dtype)


def conv2d(x, w, b, *, apply_relu=True, out_dtype=jnp.bfloat16, block_rows=None):
    """Stride-1 'same' conv.  x:(N,H,W,Cin) NHWC, w:(KH,KW,Cin,Cout), b:(Cout,)."""
    N, H, W, Cin = x.shape
    KH, KW, wcin, Cout = w.shape
    assert wcin == Cin and KH == KW and KH in (1, 3)
    ph = pw = KH // 2
    KK = KH * KW

    # --- channel tiling (never pad tiny channel counts up to 128 lanes) ------------
    if Cin <= 128:
        Cin_p = _round_up(Cin, 8)
        tci = Cin_p
    else:
        # TODO(synk): prefer 128-wide Cin/Cout tiles on v5e (4x128x128 MXU geometry).
        tci = 256 if Cin % 256 == 0 else 128
        Cin_p = _round_up(Cin, tci)
    if Cout <= 256:
        # TODO(synk): Cout<128 layers store masked (lane-sparse) tiles; pad to 128 or
        # emit a spatial-major (transposed) output for the 2/6-channel heads.
        Cout_p = _round_up(Cout, 8)
        tco = Cout_p
    else:
        tco = 256
        Cout_p = _round_up(Cout, tco)
    n_ci = Cin_p // tci
    n_co = Cout_p // tco
    out_bytes = 4 if out_dtype == jnp.float32 else 2

    # --- spatial layout -------------------------------------------------------------
    Hc = H + (H % 2)                       # even row count (any extra junk row is sliced off)
    Wp = _round_up(W + 2 * pw, 16)         # sublane alignment for the kh*Wp tap shifts
    Hpp = Hc + 2                           # top conv pad + bottom pad / halo rows
    halo_flat = 2 * Wp
    need_slab = KK > 1

    def _sub_rows(bh):
        target = max(1, 256 // Wp)         # ~256 flattened rows per MXU sub-tile
        sr = 1
        for d in range(1, bh + 1):
            if bh % d == 0 and d <= target:
                sr = d
        return sr

    def _vmem_est(bh):
        m_tile = bh * Wp
        sub_m = _sub_rows(bh) * Wp
        e = 2 * m_tile * tci * 2           # x row tile (double-buffered)
        e += 2 * halo_flat * tci * 2       # halo block
        e += 2 * KK * tci * tco * 2        # weights
        e += 2 * tco * 4                   # bias
        e += 2 * m_tile * tco * out_bytes  # output tile
        if need_slab:
            e += (sub_m + halo_flat + _GUARD_ROWS) * tci * 2
        if n_ci > 1:
            e += m_tile * tco * 4          # f32 accumulator
        return e

    if block_rows is not None:
        bh = block_rows
        assert bh % 2 == 0 and Hc % bh == 0
    else:
        bh = 2
        for cand in range(Hc, 1, -1):      # largest even row tile that fits the budget
            if Hc % cand == 0 and cand % 2 == 0 and _vmem_est(cand) <= _VMEM_BUDGET:
                bh = cand
                break
    n_t = Hc // bh
    m_tile = bh * Wp
    sr = _sub_rows(bh)
    sub_m = sr * Wp
    n_sub = bh // sr

    # TODO(synk): keep consecutive convs (conv*f->conv*s, conv*a->conv*b) in this padded
    # (Hpp, Wp, Cp) layout so the jnp.pad on entry and [:, :W, :Cout] slice on exit are
    # not round-tripped through HBM every layer.
    xpad = jnp.pad(x.astype(jnp.bfloat16),
                   ((0, 0), (ph, Hpp - H - ph), (pw, Wp - W - pw), (0, Cin_p - Cin)))
    xf = xpad.reshape(N, Hpp * Wp, Cin_p)          # contiguous reshape (free)
    wm = jnp.pad(w, ((0, 0), (0, 0), (0, Cin_p - Cin), (0, Cout_p - Cout)))
    wm = wm.reshape(KK, Cin_p, Cout_p).astype(jnp.bfloat16)
    bm = jnp.pad(b, (0, Cout_p - Cout)).reshape(1, Cout_p).astype(jnp.float32)

    # TODO(synk): for Cin<=128 layers fold the 3 kw taps into K (lane-concat shifted
    # slabs -> 3 matmuls with K=3*Cin) to improve MXU fill on conv1/conv9.
    taps = tuple(kh * Wp + kw for kh in range(KH) for kw in range(KW))

    scratch = []
    if need_slab:
        scratch.append(pltpu.VMEM((sub_m + halo_flat + _GUARD_ROWS, tci), jnp.bfloat16))
    if n_ci > 1:
        scratch.append(pltpu.VMEM((m_tile, tco), jnp.float32))

    kernel = functools.partial(
        _conv_kernel, tap_offsets=taps, m_tile=m_tile, sub_m=sub_m, n_sub=n_sub,
        halo_flat=halo_flat, relu=apply_relu, n_ci=n_ci, need_slab=need_slab)

    vlimit = int(min(64 * 2**20, max(24 * 2**20, _vmem_est(bh) * 5 // 4 + (2 << 20))))
    half = bh // 2                                  # halo block index stride (2 image rows)

    # TODO(synk): fold the batch dim into the row axis for the 2x2/1x1 bottleneck layers
    # so conv5's ~19 MB weights are DMA'd once per layer instead of once per image.
    out = pl.pallas_call(
        kernel,
        out_shape=jax.ShapeDtypeStruct((N, Hc * Wp, Cout_p), out_dtype),
        grid_spec=pltpu.PrefetchScalarGridSpec(
            num_scalar_prefetch=0,
            grid=(N, n_t, n_co, n_ci),              # Cin reduction innermost
            in_specs=[
                pl.BlockSpec((1, m_tile, tci), lambda n, t, co, ci: (n, t, ci)),
                pl.BlockSpec((1, halo_flat, tci),
                             lambda n, t, co, ci: (n, (t + 1) * half, ci)),
                pl.BlockSpec((KK, tci, tco), lambda n, t, co, ci: (0, ci, co)),
                pl.BlockSpec((1, tco), lambda n, t, co, ci: (0, co)),
            ],
            out_specs=pl.BlockSpec((1, m_tile, tco), lambda n, t, co, ci: (n, t, co)),
            scratch_shapes=scratch,
        ),
        compiler_params=pltpu.CompilerParams(
            dimension_semantics=("parallel", "parallel", "parallel", "arbitrary"),
            vmem_limit_bytes=vlimit),
    )(xf, xf, wm, bm)

    # (N, Hc*Wp, Cout_p) -> (N, Hc, Wp, Cout_p); drop junk rows/columns + channel padding.
    return out.reshape(N, Hc, Wp, Cout_p)[:, :H, :W, :Cout]


# ----------------------------- layout glue (JAX) -----------------------------
def maxpool2(x):
    # TODO(synk): fuse ReLU + 2x2 max-pool into the conv epilogue of conv1s..conv4s.
    N, H, W, C = x.shape
    return x.reshape(N, H // 2, 2, W // 2, 2, C).max(axis=(2, 4))


def upsample2(x):
    # nn.Upsample(size=2*in), default mode 'nearest' == 2x pixel repeat.
    # TODO(synk): fuse upsample + concat into the conv6a/7a/8a/9a input path (two
    # accumulating Cin passes) instead of materializing the concat in HBM.
    return jnp.repeat(jnp.repeat(x, 2, axis=1), 2, axis=2)


# ----------------------------- model definition ------------------------------
_CONV_SPECS = {
    'conv1f': (3, 4, 64), 'conv1s': (3, 64, 64),
    'conv2f': (3, 64, 128), 'conv2s': (3, 128, 128),
    'conv3f': (3, 128, 256), 'conv3s': (3, 256, 256),
    'conv4f': (3, 256, 512), 'conv4s': (3, 512, 512),
    'conv5f': (3, 512, 1024), 'conv5s': (3, 1024, 1024),
    'conv6a': (3, 1536, 512), 'conv6b': (3, 512, 512),
    'conv7a': (3, 768, 256), 'conv7b': (3, 256, 256),
    'conv8a': (3, 384, 128), 'conv8b': (3, 128, 128),
    'conv9a': (3, 192, 64), 'conv9b': (3, 64, 64), 'conv9c': (3, 64, 2),
    'outputs': (1, 2, 6),
}


def init_params(key):
    """Deterministic kaiming-normal-style init (fresh synthetic weights)."""
    params = {}
    for name, (k, cin, cout) in _CONV_SPECS.items():
        key, wk = jax.random.split(key)
        std = (2.0 / (cin * k * k)) ** 0.5
        params[name] = (
            jax.random.normal(wk, (k, k, cin, cout), jnp.float32) * std,
            jnp.zeros((cout,), jnp.float32),
        )
    return params


def forward(params, x_nchw):
    x = jnp.transpose(x_nchw, (0, 2, 3, 1)).astype(jnp.bfloat16)  # NCHW -> NHWC, bf16

    def c(name, t, relu=True, out_dtype=jnp.bfloat16):
        w, b = params[name]
        return conv2d(t, w, b, apply_relu=relu, out_dtype=out_dtype)

    conv1f = c('conv1f', x)
    conv1s = c('conv1s', conv1f)
    pool1 = maxpool2(conv1s)
    conv2f = c('conv2f', pool1)
    conv2s = c('conv2s', conv2f)
    pool2 = maxpool2(conv2s)
    conv3f = c('conv3f', pool2)
    conv3s = c('conv3s', conv3f)
    pool3 = maxpool2(conv3s)
    conv4f = c('conv4f', pool3)
    # TODO(synk): Dropout2d(0.5) treated as identity (eval-mode semantics).
    conv4s = c('conv4s', conv4f)
    pool4 = maxpool2(conv4s)
    conv5f = c('conv5f', pool4)
    conv5s = c('conv5s', conv5f)

    up6 = jnp.concatenate([upsample2(conv5s), conv4s], axis=-1)   # 1536 ch
    conv6 = c('conv6b', c('conv6a', up6))
    up7 = jnp.concatenate([upsample2(conv6), conv3s], axis=-1)    # 768 ch
    conv7 = c('conv7b', c('conv7a', up7))
    up8 = jnp.concatenate([upsample2(conv7), conv2s], axis=-1)    # 384 ch
    conv8 = c('conv8b', c('conv8a', up8))
    up9 = jnp.concatenate([upsample2(conv8), conv1s], axis=-1)    # 192 ch
    conv9 = c('conv9c', c('conv9b', c('conv9a', up9)))
    out = c('outputs', conv9, relu=False, out_dtype=jnp.float32)  # 1x1 conv, no ReLU
    return jnp.transpose(out, (0, 3, 1, 2))                       # NHWC -> NCHW


if __name__ == "__main__":
    key = jax.random.PRNGKey(0)
    pkey, xkey, ckey = jax.random.split(key, 3)
    params = init_params(pkey)

    # Small demo shape (batch=2, 4 channels, 16x16), consistent with the module.
    x = jax.random.normal(xkey, (2, 4, 16, 16), jnp.float32)      # NCHW like PyTorch

    def _ref_conv(x_nhwc, w, b, relu):
        r = jax.lax.conv_general_dilated(
            x_nhwc.astype(jnp.bfloat16).astype(jnp.float32),
            w.astype(jnp.bfloat16).astype(jnp.float32),
            (1, 1), 'SAME', dimension_numbers=('NHWC', 'HWIO', 'NHWC'),
            precision=jax.lax.Precision.HIGHEST) + b
        return jnp.maximum(r, 0.0) if relu else r

    # Check 1: first layer on the real input, forced to 4 row tiles -> exercises the
    # row-blocking + halo-stitch path against XLA's conv.
    w0, b0 = params['conv1f']
    x_nhwc = jnp.transpose(x, (0, 2, 3, 1))
    got = conv2d(x_nhwc, w0, b0, apply_relu=True, out_dtype=jnp.float32, block_rows=4)
    ref = _ref_conv(x_nhwc, w0, b0, True)
    err = float(jnp.max(jnp.abs(got - ref)))
    assert err < 5e-2, f"conv kernel mismatch (halo path): {err}"

    # Check 2: Cin=192 -> two Cin chunks -> exercises the chunked f32-accumulator path.
    kw_, kb_, kx_ = jax.random.split(ckey, 3)
    w1 = jax.random.normal(kw_, (3, 3, 192, 64), jnp.float32) * 0.05
    b1 = jax.random.normal(kb_, (64,), jnp.float32) * 0.1
    x1 = jax.random.normal(kx_, (1, 8, 8, 192), jnp.float32)
    got = conv2d(x1, w1, b1, apply_relu=True, out_dtype=jnp.float32, block_rows=2)
    ref = _ref_conv(x1, w1, b1, True)
    err = float(jnp.max(jnp.abs(got - ref)))
    assert err < 5e-2, f"conv kernel mismatch (acc path): {err}"

    fwd = jax.jit(forward)
    y = jax.block_until_ready(fwd(params, x))

    assert y.shape == (2, 6, 16, 16), y.shape
    assert bool(jnp.all(jnp.isfinite(y)))
    print("KERNEL_OK")
</pallas_src>

<mosaic_0001>
module attributes {stable_mosaic.version = 11 : i64} {
  func.func @_conv_kernel(%arg0: i32, %arg1: i32, %arg2: i32, %arg3: i32, %arg4: memref<1x128x8xbf16, #tpu.memory_space<vmem>>, %arg5: memref<1x64x8xbf16, #tpu.memory_space<vmem>>, %arg6: memref<9x8x64xbf16, #tpu.memory_space<vmem>>, %arg7: memref<1x64xf32, #tpu.memory_space<vmem>>, %arg8: memref<1x128x64xf32, #tpu.memory_space<vmem>>, %arg9: memref<208x8xbf16, #tpu.memory_space<vmem>>) attributes {dimension_semantics = [#tpu.dimension_semantics<parallel>, #tpu.dimension_semantics<parallel>, #tpu.dimension_semantics<parallel>, #tpu.dimension_semantics<arbitrary>], iteration_bounds = array<i64: 2, 4, 1, 1>, scalar_prefetch = 0 : i64, scratch_operands = 1 : i64, tpu.core_type = #tpu.core_type<tc>, window_params = [{transform_indices = @transform_0, window_bounds = array<i64: 1, 128, 8>}, {transform_indices = @transform_1, window_bounds = array<i64: 1, 64, 8>}, {transform_indices = @transform_2, window_bounds = array<i64: 9, 8, 64>}, {transform_indices = @transform_3, window_bounds = array<i64: 1, 64>}, {transform_indices = @transform_4, window_bounds = array<i64: 1, 128, 64>}]} {
    %c0 = arith.constant 0 : index
    %c0_0 = arith.constant 0 : index
    %c0_1 = arith.constant 0 : index
    %0 = vector.load %arg4[%c0, %c0_0, %c0_1] : memref<1x128x8xbf16, #tpu.memory_space<vmem>>, vector<1x128x8xbf16>
    %1 = vector.shape_cast %0 : vector<1x128x8xbf16> to vector<128x8xbf16>
    %c0_2 = arith.constant 0 : index
    %c0_3 = arith.constant 0 : index
    %2 = vector.load %arg9[%c0_2, %c0_3] : memref<208x8xbf16, #tpu.memory_space<vmem>>, vector<128x8xbf16>
    tpu.vector_store %arg9[%c0_2, %c0_3], %1 {strides = array<i32>} : memref<208x8xbf16, #tpu.memory_space<vmem>>, vector<128x8xbf16>,
    %c0_4 = arith.constant 0 : index
    %c0_5 = arith.constant 0 : index
    %c0_6 = arith.constant 0 : index
    %3 = vector.load %arg5[%c0_4, %c0_5, %c0_6] : memref<1x64x8xbf16, #tpu.memory_space<vmem>>, vector<1x64x8xbf16>
    %4 = vector.shape_cast %3 : vector<1x64x8xbf16> to vector<64x8xbf16>
    %c128 = arith.constant 128 : index
    %c0_7 = arith.constant 0 : index
    %5 = vector.load %arg9[%c128, %c0_7] : memref<208x8xbf16, #tpu.memory_space<vmem>>, vector<64x8xbf16>
    tpu.vector_store %arg9[%c128, %c0_7], %4 {strides = array<i32>} : memref<208x8xbf16, #tpu.memory_space<vmem>>, vector<64x8xbf16>,
    %cst = arith.constant 0.000000e+00 : bf16
    %6 = vector.broadcast %cst : bf16 to vector<16x8xbf16>
    %c192 = arith.constant 192 : index
    %c0_8 = arith.constant 0 : index
    %7 = vector.load %arg9[%c192, %c0_8] : memref<208x8xbf16, #tpu.memory_space<vmem>>, vector<16x8xbf16>
    tpu.vector_store %arg9[%c192, %c0_8], %6 {strides = array<i32>} : memref<208x8xbf16, #tpu.memory_space<vmem>>, vector<16x8xbf16>,
    %c0_9 = arith.constant 0 : index
    %c0_10 = arith.constant 0 : index
    %c0_11 = arith.constant 0 : index
    %8 = vector.load %arg4[%c0_9, %c0_10, %c0_11] : memref<1x128x8xbf16, #tpu.memory_space<vmem>>, vector<1x128x8xbf16>
    %9 = vector.shape_cast %8 : vector<1x128x8xbf16> to vector<128x8xbf16>
    %c0_12 = arith.constant 0 : index
    %c0_13 = arith.constant 0 : index
    %c0_14 = arith.constant 0 : index
    %10 = vector.load %arg6[%c0_12, %c0_13, %c0_14] : memref<9x8x64xbf16, #tpu.memory_space<vmem>>, vector<1x8x64xbf16>
    %11 = vector.shape_cast %10 : vector<1x8x64xbf16> to vector<8x64xbf16>
    %cst_15 = arith.constant dense<0.000000e+00> : vector<128x64xf32>
    %12 = tpu.matmul %9, %11, %cst_15 {dimension_numbers = #tpu.dot_dimension_numbers<[1], [0], [0], [1], [0, 0, 1, 1], [], []>} : vector<128x8xbf16>, vector<8x64xbf16>, vector<128x64xf32> -> vector<128x64xf32>
    %c1 = arith.constant 1 : index
    %c0_16 = arith.constant 0 : index
    %13 = vector.load %arg9[%c1, %c0_16] : memref<208x8xbf16, #tpu.memory_space<vmem>>, vector<128x8xbf16>
    %c1_17 = arith.constant 1 : index
    %c0_18 = arith.constant 0 : index
    %c0_19 = arith.constant 0 : index
    %14 = vector.load %arg6[%c1_17, %c0_18, %c0_19] : memref<9x8x64xbf16, #tpu.memory_space<vmem>>, vector<1x8x64xbf16>
    %15 = vector.shape_cast %14 : vector<1x8x64xbf16> to vector<8x64xbf16>
    %cst_20 = arith.constant dense<0.000000e+00> : vector<128x64xf32>
    %16 = tpu.matmul %13, %15, %cst_20 {dimension_numbers = #tpu.dot_dimension_numbers<[1], [0], [0], [1], [0, 0, 1, 1], [], []>} : vector<128x8xbf16>, vector<8x64xbf16>, vector<128x64xf32> -> vector<128x64xf32>
    %17 = arith.addf %12, %16 : vector<128x64xf32>
    %c2 = arith.constant 2 : index
    %c0_21 = arith.constant 0 : index
    %18 = vector.load %arg9[%c2, %c0_21] : memref<208x8xbf16, #tpu.memory_space<vmem>>, vector<128x8xbf16>
    %c2_22 = arith.constant 2 : index
    %c0_23 = arith.constant 0 : index
    %c0_24 = arith.constant 0 : index
    %19 = vector.load %arg6[%c2_22, %c0_23, %c0_24] : memref<9x8x64xbf16, #tpu.memory_space<vmem>>, vector<1x8x64xbf16>
    %20 = vector.shape_cast %19 : vector<1x8x64xbf16> to vector<8x64xbf16>
    %cst_25 = arith.constant dense<0.000000e+00> : vector<128x64xf32>
    %21 = tpu.matmul %18, %20, %cst_25 {dimension_numbers = #tpu.dot_dimension_numbers<[1], [0], [0], [1], [0, 0, 1, 1], [], []>} : vector<128x8xbf16>, vector<8x64xbf16>, vector<128x64xf32> -> vector<128x64xf32>
    %22 = arith.addf %17, %21 : vector<128x64xf32>
    %c32 = arith.constant 32 : index
    %c0_26 = arith.constant 0 : index
    %23 = vector.load %arg9[%c32, %c0_26] : memref<208x8xbf16, #tpu.memory_space<vmem>>, vector<128x8xbf16>
    %c3 = arith.constant 3 : index
    %c0_27 = arith.constant 0 : index
    %c0_28 = arith.constant 0 : index
    %24 = vector.load %arg6[%c3, %c0_27, %c0_28] : memref<9x8x64xbf16, #tpu.memory_space<vmem>>, vector<1x8x64xbf16>
    %25 = vector.shape_cast %24 : vector<1x8x64xbf16> to vector<8x64xbf16>
    %cst_29 = arith.constant dense<0.000000e+00> : vector<128x64xf32>
    %26 = tpu.matmul %23, %25, %cst_29 {dimension_numbers = #tpu.dot_dimension_numbers<[1], [0], [0], [1], [0, 0, 1, 1], [], []>} : vector<128x8xbf16>, vector<8x64xbf16>, vector<128x64xf32> -> vector<128x64xf32>
    %27 = arith.addf %22, %26 : vector<128x64xf32>
    %c33 = arith.constant 33 : index
    %c0_30 = arith.constant 0 : index
    %28 = vector.load %arg9[%c33, %c0_30] : memref<208x8xbf16, #tpu.memory_space<vmem>>, vector<128x8xbf16>
    %c4 = arith.constant 4 : index
    %c0_31 = arith.constant 0 : index
    %c0_32 = arith.constant 0 : index
    %29 = vector.load %arg6[%c4, %c0_31, %c0_32] : memref<9x8x64xbf16, #tpu.memory_space<vmem>>, vector<1x8x64xbf16>
    %30 = vector.shape_cast %29 : vector<1x8x64xbf16> to vector<8x64xbf16>
    %cst_33 = arith.constant dense<0.000000e+00> : vector<128x64xf32>
    %31 = tpu.matmul %28, %30, %cst_33 {dimension_numbers = #tpu.dot_dimension_numbers<[1], [0], [0], [1], [0, 0, 1, 1], [], []>} : vector<128x8xbf16>, vector<8x64xbf16>, vector<128x64xf32> -> vector<128x64xf32>
    %32 = arith.addf %27, %31 : vector<128x64xf32>
    %c34 = arith.constant 34 : index
    %c0_34 = arith.constant 0 : index
    %33 = vector.load %arg9[%c34, %c0_34] : memref<208x8xbf16, #tpu.memory_space<vmem>>, vector<128x8xbf16>
    %c5 = arith.constant 5 : index
    %c0_35 = arith.constant 0 : index
    %c0_36 = arith.constant 0 : index
    %34 = vector.load %arg6[%c5, %c0_35, %c0_36] : memref<9x8x64xbf16, #tpu.memory_space<vmem>>, vector<1x8x64xbf16>
    %35 = vector.shape_cast %34 : vector<1x8x64xbf16> to vector<8x64xbf16>
    %cst_37 = arith.constant dense<0.000000e+00> : vector<128x64xf32>
    %36 = tpu.matmul %33, %35, %cst_37 {dimension_numbers = #tpu.dot_dimension_numbers<[1], [0], [0], [1], [0, 0, 1, 1], [], []>} : vector<128x8xbf16>, vector<8x64xbf16>, vector<128x64xf32> -> vector<128x64xf32>
    %37 = arith.addf %32, %36 : vector<128x64xf32>
    %c64 = arith.constant 64 : index
    %c0_38 = arith.constant 0 : index
    %38 = vector.load %arg9[%c64, %c0_38] : memref<208x8xbf16, #tpu.memory_space<vmem>>, vector<128x8xbf16>
    %c6 = arith.constant 6 : index
    %c0_39 = arith.constant 0 : index
    %c0_40 = arith.constant 0 : index
    %39 = vector.load %arg6[%c6, %c0_39, %c0_40] : memref<9x8x64xbf16, #tpu.memory_space<vmem>>, vector<1x8x64xbf16>
    %40 = vector.shape_cast %39 : vector<1x8x64xbf16> to vector<8x64xbf16>
    %cst_41 = arith.constant dense<0.000000e+00> : vector<128x64xf32>
    %41 = tpu.matmul %38, %40, %cst_41 {dimension_numbers = #tpu.dot_dimension_numbers<[1], [0], [0], [1], [0, 0, 1, 1], [], []>} : vector<128x8xbf16>, vector<8x64xbf16>, vector<128x64xf32> -> vector<128x64xf32>
    %42 = arith.addf %37, %41 : vector<128x64xf32>
    %c65 = arith.constant 65 : index
    %c0_42 = arith.constant 0 : index
    %43 = vector.load %arg9[%c65, %c0_42] : memref<208x8xbf16, #tpu.memory_space<vmem>>, vector<128x8xbf16>
    %c7 = arith.constant 7 : index
    %c0_43 = arith.constant 0 : index
    %c0_44 = arith.constant 0 : index
    %44 = vector.load %arg6[%c7, %c0_43, %c0_44] : memref<9x8x64xbf16, #tpu.memory_space<vmem>>, vector<1x8x64xbf16>
    %45 = vector.shape_cast %44 : vector<1x8x64xbf16> to vector<8x64xbf16>
    %cst_45 = arith.constant dense<0.000000e+00> : vector<128x64xf32>
    %46 = tpu.matmul %43, %45, %cst_45 {dimension_numbers = #tpu.dot_dimension_numbers<[1], [0], [0], [1], [0, 0, 1, 1], [], []>} : vector<128x8xbf16>, vector<8x64xbf16>, vector<128x64xf32> -> vector<128x64xf32>
    %47 = arith.addf %42, %46 : vector<128x64xf32>
    %c66 = arith.constant 66 : index
    %c0_46 = arith.constant 0 : index
    %48 = vector.load %arg9[%c66, %c0_46] : memref<208x8xbf16, #tpu.memory_space<vmem>>, vector<128x8xbf16>
    %c8 = arith.constant 8 : index
    %c0_47 = arith.constant 0 : index
    %c0_48 = arith.constant 0 : index
    %49 = vector.load %arg6[%c8, %c0_47, %c0_48] : memref<9x8x64xbf16, #tpu.memory_space<vmem>>, vector<1x8x64xbf16>
    %50 = vector.shape_cast %49 : vector<1x8x64xbf16> to vector<8x64xbf16>
    %cst_49 = arith.constant dense<0.000000e+00> : vector<128x64xf32>
    %51 = tpu.matmul %48, %50, %cst_49 {dimension_numbers = #tpu.dot_dimension_numbers<[1], [0], [0], [1], [0, 0, 1, 1], [], []>} : vector<128x8xbf16>, vector<8x64xbf16>, vector<128x64xf32> -> vector<128x64xf32>
    %52 = arith.addf %47, %51 : vector<128x64xf32>
    %c0_50 = arith.constant 0 : index
    %c0_51 = arith.constant 0 : index
    %53 = vector.load %arg7[%c0_50, %c0_51] : memref<1x64xf32, #tpu.memory_space<vmem>>, vector<1x64xf32>
    %54 = vector.broadcast %53 : vector<1x64xf32> to vector<128x64xf32>
    %55 = arith.addf %52, %54 : vector<128x64xf32>
    %cst_52 = arith.constant 0.000000e+00 : f32
    %56 = vector.broadcast %cst_52 : f32 to vector<128x64xf32>
    %57 = arith.maximumf %55, %56 : vector<128x64xf32>
    %c0_53 = arith.constant 0 : index
    %c0_54 = arith.constant 0 : index
    %c0_55 = arith.constant 0 : index
    %58 = vector.load %arg8[%c0_53, %c0_54, %c0_55] : memref<1x128x64xf32, #tpu.memory_space<vmem>>, vector<1x128x64xf32>
    %59 = vector.shape_cast %58 : vector<1x128x64xf32> to vector<128x64xf32>
    %60 = vector.shape_cast %57 : vector<128x64xf32> to vector<1x128x64xf32>
    tpu.vector_store %arg8[%c0_53, %c0_54, %c0_55], %60 {strides = array<i32>} : memref<1x128x64xf32, #tpu.memory_space<vmem>>, vector<1x128x64xf32>,
    return
  }
  func.func @transform_0(%arg0: i32, %arg1: i32, %arg2: i32, %arg3: i32) -> (i32, i32, i32) {
    %c0_i32 = arith.constant 0 : i32
    return %arg0, %arg1, %arg3 : i32, i32, i32
  }
  func.func @transform_1(%arg0: i32, %arg1: i32, %arg2: i32, %arg3: i32) -> (i32, i32, i32) {
    %c1_i32 = arith.constant 1 : i32
    %0 = arith.addi %arg1, %c1_i32 : i32
    %c2_i32 = arith.constant 2 : i32
    %1 = arith.muli %0, %c2_i32 : i32
    %c0_i32 = arith.constant 0 : i32
    return %arg0, %1, %arg3 : i32, i32, i32
  }
  func.func @transform_2(%arg0: i32, %arg1: i32, %arg2: i32, %arg3: i32) -> (i32, i32, i32) {
    %c0_i32 = arith.constant 0 : i32
    %c0_i32_0 = arith.constant 0 : i32
    return %c0_i32, %arg3, %arg2 : i32, i32, i32
  }
  func.func @transform_3(%arg0: i32, %arg1: i32, %arg2: i32, %arg3: i32) -> (i32, i32) {
    %c0_i32 = arith.constant 0 : i32
    %c0_i32_0 = arith.constant 0 : i32
    return %c0_i32, %arg2 : i32, i32
  }
  func.func @transform_4(%arg0: i32, %arg1: i32, %arg2: i32, %arg3: i32) -> (i32, i32, i32) {
    %c0_i32 = arith.constant 0 : i32
    return %arg0, %arg1, %arg2 : i32, i32, i32
  }
}

</mosaic_0001>

<bundles_post_ra>
// kernel: tpu_custom_call.1
= control target key start
LH: loop header
LB: loop body
LE: loop exit
PB: predicated region body
PF: predicated region fallthrough
CT: control target
= control target key end

     0   :  { %s2558_s15 = smov 0   ;;  %s2560_s16 = smov 0   ;;  %s3095_s0 = inlined_call_operand.vmem [shape: bf16[2,576,8], index: 0, kind: input, shape index: {}]   ;;  %s3096_s1 = inlined_call_operand.vmem [shape: bf16[2,576,8], index: 1, kind: input, shape index: {}]   ;;  %s3097_s2 = inlined_call_operand.vmem [shape: bf16[9,8,64], index: 2, kind: input, shape index: {}]   ;;  %s3098_s3 = inlined_call_operand.vmem [shape: f32[1,64], index: 3, kind: input, shape index: {}]   ;;  %s3099_s4 = inlined_call_operand.vmem [shape: f32[2,512,64], index: 4, kind: output, shape index: {}]  }
   0x1   :  { %s2562_s17 = smov 0   ;;  %s2564_s18 = smov 0  }
   0x2   :  { %s2566_s19 = smov 0  }
   0x3 LB: > { %s36_s20 = sadd.s32 1, %s2522_s17  ;;  %s40_s21 = sadd.s32 1, %s2526_s18  ;;  %s2530_s19 = sphi %s2566_s19, %s14_s19   ;;  %s2526_s18 = sphi %s2564_s18, %s3103_s18   ;;  %s2522_s17 = sphi %s2562_s17, %s3102_s17   ;;  %s2518_s16 = sphi %s2560_s16, %s3101_s16   ;;  %s2514_s15 = sphi %s2558_s15, %s3100_s15  }
   0x4   : > { %p38_p0 = scmp.ge.s32.totalorder %s36_s20, 4  ;;  %p2098_p1 = scmp.ge.s32.totalorder %s2530_s19, 1 }
   0x5   : > { %p264_p2 = scmp.lt.s32.totalorder %s2530_s19, 9 }
   0x6   : > { %s3105_s20 = smov (%p38_p0, %s36_s20), 0  ;;  %s3107_s21 = smov (!%p38_p0, %s40_s21), %s2526_s18 }
   0x7   : > { %p265_p3 = pnand %p2098_p1, %p264_p2  ;;  %p42_p4 = scmp.ge.s32.totalorder %s3107_s21, 2 }
   0x8   : > { %s2591_s24 = sshll.u32 (!%p265_p3), %s2514_s15, 4  ;;  %p337_p5 = scmp.lt.s32.totalorder (!%p265_p3), %s2518_s16, 1 }
   0x9   : > { %s3109_s21 = smov (%p42_p4, %s3107_s21), 0  ;;  %268 = sbr.rel (%p265_p3) target bundleno = 467 (0x1d3), region = 36 }
   0xa   : > { %p339_p6 = scmp.lt.s32.totalorder (!%p265_p3), %s2591_s24, 71  ;;  %s2434_s12 = sadd.s32 (!%p265_p3), 16, %s2591_s24 }
   0xb   : > { %p358_p7 = scmp.lt.s32.totalorder (!%p265_p3), %s2434_s12, 71  ;;  %p383_p8 = scmp.lt.s32.totalorder (!%p265_p3), %s2591_s24, 63 }
   0xe   : > { %v2107_v0 = vld [vmem:[%s3097_s2 + $0x4] sm:$0xf]  ;;  %vm618_vm0 = vcmask 1043456   ;;  %s3111_s16 = smov (!%p337_p5, %s2518_s16), 1  ;;  %v2184_v2 = vld [vmem:[%s3097_s2 + $0x8] sm:$0xf] }
   0xf   : > { %v620_v1 = vsel %vm618_vm0, %v2107_v0, 0  ;;  %s340_s25 = scalar_select %p339_p6, %s2591_s24, 71  ;;  %v836_v3 = vsel %vm618_vm0, %v2184_v2, 0  ;;  %vm410_vm1 = vcmask 60416   ;;  %v2193_v4 = vld [vmem:[%s3097_s2 + $0xc] sm:$0xf] }
  0x10   : > { %2446 = vmatpush.bf16.msra.mxu1 %v620_v1  ;;  %2447 = vmatpush.bf16.msra.mxu2 %v620_v1  ;;  %s2449_s28 = smul.u32 72, %s3111_s16  ;;  %v461_v5 = vld [vmem:[%s3097_s2] sm:$0xf]  ;;  %v986_v6 = vsel %vm618_vm0, %v2193_v4, 0  ;;  %v2234_v15 = vld [vmem:[%s3097_s2 + $0x10] sm:$0xf] }
  0x11   : > { %2448 = vmatpush.bf16.msra.mxu3 %v620_v1  ;;  %629 = vmatpush.bf16.msra.mxu0 %v620_v1  ;;  %v736_v7 = vsel %vm618_vm0, %v461_v5, 0  ;;  %vm524_vm2 = vsmask.f32 7424  ;;  %v1208_v19 = vsel %vm618_vm0, %v2234_v15, 0  ;;  %s3113_s12 = smov (!%p358_p7, %s2434_s12), 71  ;;  %vm593_vm3 = vcmask 64512  }
  0x12   : > { %s345_s29 = sadd.s32 %s2449_s28, %s340_s25  ;;  %s364_s15 = sadd.s32 %s2449_s28, %s3113_s12  ;;  %v2280_v2 = vld [vmem:[%s3097_s2 + $0x18] sm:$0xf]  ;;  %v2358_v15 = vld [vmem:[%s3097_s2 + $0x20] sm:$0xf]  ;;  %vm793_vm4 = vcmask 1046528   ;;  %vm1913_vm5 = vcmask 523264  }
  0x13   : > { %s2100_s30 = sshll.u32 %s345_s29, 2  ;;  %s2103_s22 = sshll.u32 %s364_s15, 2  ;;  %v1473_v5 = vsel %vm618_vm0, %v2280_v2, 0 }
  0x14   : > { %845 = vmatpush.bf16.msrb.mxu2 %v836_v3  ;;  %s2614_s11 = scalar_lea.vmem %s3095_s0, %s2100_s30  ;;  %745 = vmatpush.bf16.msrb.mxu1 %v736_v7  ;;  %s2659_s26 = scalar_lea.vmem %s3096_s1, %s2103_s22 }
  0x15   : > { %v398_v8 = vld [vmem:[%s2614_s11 + $0x10] sm:$0xf]  ;;  %v399_v9 = vld [vmem:[%s2614_s11 + $0x14] sm:$0xf]  ;;  %v400_v10 = vld [vmem:[%s2614_s11 + $0x18] sm:$0xf]  ;;  %995 = vmatpush.bf16.msrb.mxu3 %v986_v6  ;;  %1217 = vmatpush.bf16.msrb.mxu0 %v1208_v19 }
  0x16   : > { %v401_v11 = vld [vmem:[%s2614_s11 + $0x1c] sm:$0xf]  ;;  %415 = vst.msk [vmem:[#allocation2 + $0x10] sm:$0xf] %vm410_vm1, %v398_v8  ;;  %v402_v12 = vld [vmem:[%s2614_s11 + $0x20] sm:$0xf] }
  0x17   : > { %416 = vst.msk [vmem:[#allocation2 + $0x14] sm:$0xf] %vm410_vm1, %v399_v9  ;;  %v403_v13 = vld [vmem:[%s2614_s11 + $0x24] sm:$0xf]  ;;  %v404_v14 = vld [vmem:[%s2614_s11 + $0x28] sm:$0xf] }
  0x18   : > { %417 = vst.msk [vmem:[#allocation2 + $0x18] sm:$0xf] %vm410_vm1, %v400_v10  ;;  %v405_v16 = vld [vmem:[%s2614_s11 + $0x2c] sm:$0xf]  ;;  %v406_v17 = vld [vmem:[%s2614_s11 + $0x30] sm:$0xf] }
  0x19   : > { %418 = vst.msk [vmem:[#allocation2 + $0x1c] sm:$0xf] %vm410_vm1, %v401_v11  ;;  %v407_v18 = vld [vmem:[%s2614_s11 + $0x34] sm:$0xf]  ;;  %v408_v20 = vld [vmem:[%s2614_s11 + $0x38] sm:$0xf] }
  0x1a   : > { %419 = vst.msk [vmem:[#allocation2 + $0x20] sm:$0xf] %vm410_vm1, %v402_v12  ;;  %v409_v21 = vld [vmem:[%s2614_s11 + $0x3c] sm:$0xf]  ;;  %v394_v23 = vld [vmem:[%s2614_s11] sm:$0xf] }
  0x1b   : > { %420 = vst.msk [vmem:[#allocation2 + $0x24] sm:$0xf] %vm410_vm1, %v403_v13  ;;  %v395_v24 = vld [vmem:[%s2614_s11 + $0x4] sm:$0xf]  ;;  %v396_v28 = vld [vmem:[%s2614_s11 + $0x8] sm:$0xf] }
  0x1c   : > { %421 = vst.msk [vmem:[#allocation2 + $0x28] sm:$0xf] %vm410_vm1, %v404_v14  ;;  %v397_v29 = vld [vmem:[%s2614_s11 + $0xc] sm:$0xf]  ;;  %v427_v33 = vld [vmem:[%s2659_s26] sm:$0xf] }
  0x1d   : > { %422 = vst.msk [vmem:[#allocation2 + $0x2c] sm:$0xf] %vm410_vm1, %v405_v16  ;;  %v2321_v9 = vld [vmem:[%s3097_s2 + $0x1c] sm:$0xf]  ;;  %v2271_v10 = vld [vmem:[%s3097_s2 + $0x14] sm:$0xf] }
  0x1e   : > { %v2643_v22 = vld [vmem:[#allocation2 + $0x10] sm:$0xff]  ;;  %423 = vst.msk [vmem:[#allocation2 + $0x30] sm:$0xf] %vm410_vm1, %v406_v17  ;;  %v1695_v13 = vsel %vm618_vm0, %v2321_v9, 0  ;;  %v1323_v14 = vsel %vm618_vm0, %v2271_v10, 0  ;;  %v1810_v16 = vsel %vm618_vm0, %v2358_v15, 0 }
  0x1f   : > { %424 = vst.msk [vmem:[#allocation2 + $0x34] sm:$0xf] %vm410_vm1, %v407_v18  ;;  %v541_v26 = vshll.u32 %v2643_v22, 16  ;;  %v545_v27 = vshrl.u32 %v2643_v22, 16  ;;  %v2379_v2 = vld [vmem:[%s2614_s11 + $0x18] sm:$0xff]  ;;  %s3115_s24 = smov (!%p383_p8, %s2591_s24), 63 }
  0x20   : > { %v2651_v25 = vld [vmem:[#allocation2 + $0x18] sm:$0xff]  ;;  %425 = vst.msk [vmem:[#allocation2 + $0x38] sm:$0xf] %vm410_vm1, %v408_v20  ;;  %v429_v15 = vld [vmem:[%s2659_s26 + $0x8] sm:$0xf]  ;;  %s2105_s9 = sshll.u32 %s3111_s16, 6 }
  0x21   : > { %426 = vst.msk [vmem:[#allocation2 + $0x3c] sm:$0xf] %vm410_vm1, %v409_v21  ;;  %v2664_v30 = vrot.slane %v541_v26, 1  ;;  %v549_v31 = vshll.u32 %v2651_v25, 16  ;;  %v553_v54 = vshrl.u32 %v2651_v25, 16  ;;  %s389_s10 = sadd.s32 %s2105_s9, %s3115_s24 }
  0x22   : > { %v2667_v32 = vld [vmem:[#allocation2 + $0x20] sm:$0xff]  ;;  %411 = vst.msk [vmem:[#allocation2] sm:$0xf] %vm410_vm1, %v394_v23  ;;  %s2106_s13 = sshll.u32 %s389_s10, 3 }
  0x23   : > { %412 = vst.msk [vmem:[#allocation2 + $0x4] sm:$0xf] %vm410_vm1, %v395_v24  ;;  %v547_v34 = vor.u32 %v545_v27, %v2664_v30  ;;  %v551_v35 = vrot.slane %v549_v31, 1  ;;  %v557_v37 = vshll.u32 %v2667_v32, 16  ;;  %v561_v38 = vshrl.u32 %v2667_v32, 16  ;;  %v2376_v31 = vld [vmem:[%s2614_s11] sm:$0xff]  ;;  %s3017_s24 = scalar_lea.vmem %s3099_s4, %s2106_s13 }
  0x24   : > { %v2673_v36 = vld [vmem:[#allocation2 + $0x28] sm:$0xff]  ;;  %413 = vst.msk [vmem:[#allocation2 + $0x8] sm:$0xf] %vm410_vm1, %v396_v28 }
  0x25   : > { %414 = vst.msk [vmem:[#allocation2 + $0xc] sm:$0xf] %vm410_vm1, %v397_v29  ;;  %v552_v39 = vsel %vm524_vm2, %v547_v34, %v551_v35  ;;  %v559_v40 = vrot.slane %v557_v37, 1  ;;  %v565_v41 = vshll.u32 %v2673_v36, 16  ;;  %v555_v0 = vor.u32 %v553_v54, %v551_v35  ;;  %v2438_v29 = vld [vmem:[#allocation2 + $0x10] sm:$0xff]   ;;  %v2733_v35 = vld [vmem:[#allocation2 + $0x18] sm:$0xff] }
  0x26   : > { %v2681_v42 = vld [vmem:[#allocation2 + $0x30] sm:$0xff]  ;;  %435 = vst.msk [vmem:[#allocation2 + $0x40] sm:$0xf] %vm410_vm1, %v427_v33  ;;  %2138 = vmatmul.msk.bf16.vlgmr.msra.gmra.mxu1 %vm593_vm3, %v552_v39  ;;  %v569_v1 = vshrl.u32 %v2673_v36, 16  ;;  %v1118_v37 = vshll.u32 %v2438_v29, 16  ;;  %v1116_v39 = vshrl.u32 %v2438_v29, 16 }
  0x27   : > { %v563_v43 = vor.u32 %v561_v38, %v559_v40  ;;  %v567_v44 = vrot.slane %v565_v41, 1  ;;  %v573_v46 = vshll.u32 %v2681_v42, 16  ;;  %v577_v47 = vshrl.u32 %v2681_v42, 16  ;;  %1332 = vmatpush.bf16.msra.mxu1 %v1323_v14  ;;  %v2391_v41 = vld [vmem:[#allocation2 + $0x10] sm:$0xff]  ;;  %437 = vst.msk [vmem:[#allocation2 + $0x48] sm:$0xf] %vm410_vm1, %v429_v15 }
  0x28   : > { %v2685_v45 = vld [vmem:[#allocation2 + $0x38] sm:$0xff]  ;;  %v560_v7 = vsel %vm524_vm2, %v555_v0, %v559_v40  ;;  %v1120_v40 = vrot.slane %v1118_v37, 1  ;;  %v1282_v15 = vrot.slane %v2733_v35, 1 }
  0x29   : > { %v568_v48 = vsel %vm524_vm2, %v563_v43, %v567_v44  ;;  %v575_v49 = vrot.slane %v573_v46, 1  ;;  %v581_v50 = vshll.u32 %v2685_v45, 16  ;;  %v571_v8 = vor.u32 %v569_v1, %v567_v44  ;;  %v2436_v26 = vld [vmem:[#allocation2] sm:$0xe]  ;;  %v2782_v14 = vld [vmem:[#allocation2 + $0x38] sm:$0xff] }
  0x2a   : > { %v2422_v51 = vld [vmem:[#allocation2] sm:$0xff]   ;;  %2140 = vmatmul.msk.bf16.vlgmr.msra.gmra.mxu2 %vm593_vm3, %v568_v48  ;;  %v585_v11 = vshrl.u32 %v2685_v45, 16  ;;  %v1121_v43 = vor.u32 %v1120_v40, %v1116_v39  ;;  %v797_v48 = vrot.slane %v2643_v22, 1  ;;  %v2392_v22 = vld [vmem:[#allocation2 + $0x18] sm:$0xff] }
  0x2b   : > { %v526_v52 = vshrl.u32 %v2422_v51, 16  ;;  %v528_v53 = vshll.u32 %v2422_v51, 16  ;;  %v579_v55 = vor.u32 %v577_v47, %v575_v49  ;;  %v583_v56 = vrot.slane %v581_v50, 1  ;;  %1482 = vmatpush.bf16.msra.mxu2 %v1473_v5  ;;  %v2435_v24 = vld [vmem:[#allocation2] sm:$0xf0]  ;;  %v2377_v47 = vld [vmem:[%s2614_s11 + $0x8] sm:$0xff] }
  0x2c   : > { %v2693_v57 = vld [vmem:[#allocation2 + $0x8] sm:$0xff]  ;;  %v576_v17 = vsel %vm524_vm2, %v571_v8, %v575_v49  ;;  %v2437_v28 = vor.u32 %v2436_v26, %v2435_v24  ;;  %v2744_v49 = vld [vmem:[#allocation2 + $0x20] sm:$0xff]  ;;  %v799_v50 = vrot.slane %v2651_v25, 1  ;;  %v801_v51 = vrot.slane %v2667_v32, 1  ;;  %v2378_v32 = vld [vmem:[%s2614_s11 + $0x10] sm:$0xff] }
  0x2d   : > { %v530_v58 = vrot.slane %v528_v53, 1  ;;  %v478_v59 = vld [vmem:[#allocation2 + $0x40] sm:$0x1]  ;;  %v584_v60 = vsel %vm524_vm2, %v579_v55, %v583_v56  ;;  %v533_v61 = vshll.u32 %v2693_v57, 16  ;;  %v587_v18 = vor.u32 %v585_v11, %v583_v56  ;;  %v428_v5 = vld [vmem:[%s2659_s26 + $0x4] sm:$0xf] }
  0x2e   : > { %v514_v62 = vunpack.c.l.b16 %v478_v59  ;;  %2142 = vmatmul.msk.bf16.vlgmr.msra.gmra.mxu3 %vm593_vm3, %v584_v60  ;;  %v537_v20 = vshrl.u32 %v2693_v57, 16  ;;  %v794_v33 = vrot.slane %v2437_v28, 1  ;;  %v795_v34 = vrot.slane %v2693_v57, 1  ;;  %436 = vst.msk [vmem:[#allocation2 + $0x44] sm:$0xf] %vm410_vm1, %v428_v5  ;;  %v2394_v8 = vld [vmem:[#allocation2 + $0x28] sm:$0xff] }
  0x2f   : > { %v531_v63 = vor.u32 %v530_v58, %v526_v52  ;;  %v535_v3 = vrot.slane %v533_v61, 1  ;;  %1704 = vmatpush.bf16.msra.mxu3 %v1695_v13  ;;  %v1127_v53 = vshrl.u32 %v2733_v35, 16  ;;  %v1131_v54 = vshll.u32 %v2744_v49, 16  ;;  %v2758_v58 = vld [vmem:[#allocation2 + $0x28] sm:$0xff]  ;;  %v431_v24 = vld [vmem:[%s2659_s26 + $0x10] sm:$0xf] }
  0x30   : > { %v2702_v4 = vpack.c.b16 %v514_v62, %v514_v62  ;;  %v796_v38 = vsel %vm793_vm4, %v794_v33, %v795_v34  ;;  %v798_v52 = vsel %vm793_vm4, %v795_v34, %v797_v48  ;;  %v802_v55 = vsel %vm793_vm4, %v799_v50, %v801_v51  ;;  %v2393_v62 = vld [vmem:[#allocation2 + $0x20] sm:$0xff]  ;;  %439 = vst.msk [vmem:[#allocation2 + $0x50] sm:$0xf] %vm410_vm1, %v431_v24  ;;  %v2381_v26 = vld [vmem:[%s2614_s11 + $0x28] sm:$0xff]  ;;  %v2396_v34 = vld [vmem:[#allocation2 + $0x38] sm:$0xff] }
  0x31   : > { %v536_v6 = vsel %vm524_vm2, %v531_v63, %v535_v3  ;;  %v539_v23 = vor.u32 %v537_v20, %v535_v3  ;;  %v1133_v57 = vrot.slane %v1131_v54, 1  ;;  %v800_v59 = vsel %vm793_vm4, %v797_v48, %v799_v50  ;;  %v2769_v3 = vld [vmem:[#allocation2 + $0x30] sm:$0xff] }
  0x32   : > { %2136 = vmatmul.msk.bf16.vlgmr.msra.gmra.mxu0 %vm593_vm3, %v536_v6  ;;  %v589_v12 = vshll.u32 %v2702_v4, 16  ;;  %v1135_v60 = vshrl.u32 %v2744_v49, 16  ;;  %v1139_v61 = vshll.u32 %v2758_v58, 16  ;;  %v1143_v6 = vshrl.u32 %v2758_v58, 16 }
  0x33   : > { %1819 = vmatpush.bf16.msra.mxu0 %v1810_v16  ;;  %v544_v27 = vsel %vm524_vm2, %v539_v23, %v2664_v30  ;;  %v1123_v30 = vshll.u32 %v2733_v35, 16  ;;  %v803_v13 = vrot.slane %v2673_v36, 1  ;;  %v430_v16 = vld [vmem:[%s2659_s26 + $0xc] sm:$0xf]  ;;  %v2395_v36 = vld [vmem:[#allocation2 + $0x30] sm:$0xff]  ;;  %v2406_v35 = vld [vmem:[#allocation2 + $0x20] sm:$0xff] }
  0x34   : > { %v591_v19 = vrot.slane %v589_v12, 1  ;;  %v1137_v63 = vor.u32 %v1135_v60, %v1133_v57  ;;  %v1141_v0 = vrot.slane %v1139_v61, 1  ;;  %v2380_v12 = vld [vmem:[%s2614_s11 + $0x20] sm:$0xff]  ;;  %438 = vst.msk [vmem:[#allocation2 + $0x4c] sm:$0xf] %vm410_vm1, %v430_v16  ;;  %v2852_v16 = vld [vmem:[#allocation2 + $0x28] sm:$0xff] }
  0x35   : > { %v1125_v44 = vrot.slane %v1123_v30, 1  ;;  %v2800_v28 = vld [vmem:[#allocation2 + $0x40] sm:$0xff]  ;;  %v807_v30 = vrot.slane %v2685_v45, 1 }
  0x36   : > { %2139 = vmatmul.msk.bf16.gmra.mxu1 %vm593_vm3, %v560_v7  ;;  %v592_v21 = vsel %vm524_vm2, %v587_v18, %v591_v19  ;;  %v1142_v1 = vsel %vm524_vm2, %v1137_v63, %v1141_v0  ;;  %v1147_v7 = vshll.u32 %v2769_v3, 16  ;;  %v1145_v9 = vor.u32 %v1143_v6, %v1141_v0  ;;  %v2439_v0 = vld [vmem:[#allocation2 + $0x10] sm:$0xf0] }
  0x37   : > { %v1126_v46 = vsel %vm524_vm2, %v1121_v43, %v1125_v44  ;;  %v1129_v56 = vor.u32 %v1127_v53, %v1125_v44  ;;  %v1151_v18 = vshrl.u32 %v2769_v3, 16  ;;  %v1155_v19 = vshll.u32 %v2782_v14, 16 }
  0x38   : > { %v1149_v10 = vrot.slane %v1147_v7, 1  ;;  %v1163_v33 = vshll.u32 %v2800_v28, 16  ;;  %v1167_v44 = vshrl.u32 %v2800_v28, 16 }
  0x39   : > { %v1134_v25 = vsel %vm524_vm2, %v1129_v56, %v1133_v57  ;;  %v2383_v56 = vld [vmem:[%s2614_s11 + $0x38] sm:$0xff] }
  0x3a   : > { %2141 = vmatmul.msk.bf16.gmra.mxu2 %vm593_vm3, %v576_v17  ;;  %v1150_v11 = vsel %vm524_vm2, %v1145_v9, %v1149_v10  ;;  %v804_v17 = vsel %vm793_vm4, %v801_v51, %v803_v13  ;;  %v1153_v20 = vor.u32 %v1151_v18, %v1149_v10  ;;  %v2442_v9 = vld [vmem:[#allocation2 + $0x20] sm:$0xff]  }
  0x3e   : > { %2143 = vmatmul.msk.bf16.gmra.mxu3 %vm593_vm3, %v592_v21  ;;  %v1157_v21 = vrot.slane %v1155_v19, 1 }
  0x40   : > { %v1158_v23 = vsel %vm524_vm2, %v1153_v20, %v1157_v21  ;;  %v1603_v20 = vshrl.u32 %v2442_v9, 16 }
  0x42   : > { %2137 = vmatmul.msk.bf16.gmra.mxu0 %vm593_vm3, %v544_v27  ;;  %v805_v27 = vrot.slane %v2681_v42, 1  ;;  %v2382_v42 = vld [vmem:[%s2614_s11 + $0x30] sm:$0xff] }
  0x44   : > { %v806_v29 = vsel %vm793_vm4, %v803_v13, %v805_v27  ;;  %v808_v43 = vsel %vm793_vm4, %v805_v27, %v807_v30  ;;  %v2444_v27 = vld [vmem:[#allocation2 + $0x20] sm:$0xe] }
  0x46   : > { %2176 = vmatmul.msk.bf16.vlgmr.msrb.gmra.mxu1 %vm593_vm3, %v2376_v31  ;;  %v1159_v31 = vshrl.u32 %v2782_v14, 16 }
  0x48   : > { %v1161_v37 = vor.u32 %v1159_v31, %v1157_v21 }
  0x4a   : > { %2185 = vmatmul.msk.bf16.vlgmr.msrb.gmra.mxu2 %vm593_vm3, %v796_v38  ;;  %v1165_v38 = vrot.slane %v1163_v33, 1 }
  0x4c   : > { %v1166_v39 = vsel %vm524_vm2, %v1161_v37, %v1165_v38  ;;  %v1169_v48 = vor.u32 %v1167_v44, %v1165_v38 }
  0x4e   : > { %2226 = vmatmul.msk.bf16.vlgmr.msrb.gmra.mxu3 %vm593_vm3, %v2391_v41  ;;  %v2814_v41 = vld [vmem:[#allocation2 + $0x48] sm:$0xff] }
  0x52   : > { %2263 = vmatmul.msk.bf16.vlgmr.msrb.gmra.mxu0 %vm593_vm3, %v1126_v46  ;;  %v1171_v46 = vshll.u32 %v2814_v41, 16 }
  0x54   : > { %v1173_v50 = vrot.slane %v1171_v46, 1 }
  0x56   : > { %2177 = vmatmul.msk.bf16.gmra.mxu1 %vm593_vm3, %v2377_v47  ;;  %v2397_v47 = vld [vmem:[#allocation2 + $0x40] sm:$0xff]  ;;  %v1174_v54 = vsel %vm524_vm2, %v1169_v48, %v1173_v50 }
  0x5a   : > { %2186 = vmatmul.msk.bf16.gmra.mxu2 %vm593_vm3, %v798_v52  ;;  %v1069_v52 = vld [vmem:[#allocation2 + $0x50] sm:$0x1] }
  0x5e   : > { %2227 = vmatmul.msk.bf16.gmra.mxu3 %vm593_vm3, %v2392_v22 }
  0x62   : > { %2264 = vmatmul.msk.bf16.gmra.mxu0 %vm593_vm3, %v1134_v25  ;;  %v809_v25 = vrot.slane %v2702_v4, 1  ;;  %v2398_v4 = vld [vmem:[#allocation2 + $0x48] sm:$0xff] }
  0x64   : > { %v810_v61 = vsel %vm793_vm4, %v807_v30, %v809_v25  ;;  %v1769_v30 = vrot.slane %v2852_v16, 1 }
  0x66   : > { %2178 = vmatmul.msk.bf16.gmra.mxu1 %vm593_vm3, %v2378_v32 }
  0x6a   : > { %2187 = vmatmul.msk.bf16.gmra.mxu2 %vm593_vm3, %v800_v59 }
  0x6e   : > { %2228 = vmatmul.msk.bf16.gmra.mxu3 %vm593_vm3, %v2393_v62  ;;  %v1175_v62 = vshrl.u32 %v2814_v41, 16 }
  0x70   : > { %v1177_v5 = vor.u32 %v1175_v62, %v1173_v50 }
  0x72   : > { %2265 = vmatmul.msk.bf16.gmra.mxu0 %vm593_vm3, %v1142_v1  ;;  %v2440_v1 = vld [vmem:[#allocation2 + $0x10] sm:$0xe] }
  0x76   : > { %2179 = vmatmul.msk.bf16.gmra.mxu1 %vm593_vm3, %v2379_v2 }
  0x7a   : > { %2188 = vmatmul.msk.bf16.gmra.mxu2 %vm593_vm3, %v802_v55  ;;  %v1105_v55 = vunpack.c.l.b16 %v1069_v52  ;;  %v1284_v52 = vrot.slane %v2744_v49, 1 }
  0x7c   : > { %v2834_v32 = vpack.c.b16 %v1105_v55, %v1105_v55  ;;  %v1285_v25 = vsel %vm793_vm4, %v1282_v15, %v1284_v52 }
  0x7e   : > { %2229 = vmatmul.msk.bf16.gmra.mxu3 %vm593_vm3, %v2394_v8  ;;  %v1179_v63 = vshll.u32 %v2834_v32, 16  ;;  %v2441_v8 = vor.u32 %v2440_v1, %v2439_v0 }
  0x80   : > { %v1181_v6 = vrot.slane %v1179_v63, 1  ;;  %v1281_v13 = vrot.slane %v2441_v8, 1 }
  0x82   : > { %2266 = vmatmul.msk.bf16.gmra.mxu0 %vm593_vm3, %v1150_v11 }
  0x86   : > { %2180 = vmatmul.msk.bf16.gmra.mxu1 %vm593_vm3, %v2380_v12  ;;  %v1182_v12 = vsel %vm524_vm2, %v1177_v5, %v1181_v6 }
  0x8a   : > { %2189 = vmatmul.msk.bf16.gmra.mxu2 %vm593_vm3, %v804_v17  ;;  %v1605_v17 = vshll.u32 %v2442_v9, 16 }
  0x8c   : > { %v1607_v21 = vrot.slane %v1605_v17, 1 }
  0x8e   : > { %2230 = vmatmul.msk.bf16.gmra.mxu3 %vm593_vm3, %v2395_v36  ;;  %v1283_v36 = vsel %vm793_vm4, %v1281_v13, %v1282_v15  ;;  %v1608_v33 = vor.u32 %v1607_v21, %v1603_v20  ;;  %v1286_v21 = vrot.slane %v2758_v58, 1  ;;  %v2408_v58 = vld [vmem:[#allocation2 + $0x30] sm:$0xff] }
  0x92   : > { %2267 = vmatmul.msk.bf16.gmra.mxu0 %vm593_vm3, %v1158_v23  ;;  %v1610_v23 = vshll.u32 %v2852_v16, 16 }
  0x96   : > { %2181 = vmatmul.msk.bf16.gmra.mxu1 %vm593_vm3, %v2381_v26  ;;  %v2443_v26 = vld [vmem:[#allocation2 + $0x20] sm:$0xf0] }
  0x97   : > { %v2445_v37 = vor.u32 %v2444_v27, %v2443_v26 }
  0x9a   : > { %2190 = vmatmul.msk.bf16.gmra.mxu2 %vm593_vm3, %v806_v29 }
  0x9e   : > { %2231 = vmatmul.msk.bf16.gmra.mxu3 %vm593_vm3, %v2396_v34  ;;  %v1612_v34 = vrot.slane %v1610_v23, 1  ;;  %v2883_v23 = vld [vmem:[#allocation2 + $0x38] sm:$0xff] }
  0xa2   : > { %2268 = vmatmul.msk.bf16.gmra.mxu0 %vm593_vm3, %v1166_v39  ;;  %v1613_v39 = vsel %vm524_vm2, %v1608_v33, %v1612_v34  ;;  %v1626_v33 = vshll.u32 %v2883_v23, 16 }
  0xa3   : > { %v2811_v40 = vpop.f32.mrf.mxu1 }
  0xa6   : > { %2182 = vmatmul.msk.bf16.gmra.mxu1 %vm593_vm3, %v2382_v42  ;;  %v1768_v42 = vrot.slane %v2445_v37, 1 }
  0xa8   : > { %v1770_v50 = vsel %vm793_vm4, %v1768_v42, %v1769_v30 }
  0xaa   : > { %2191 = vmatmul.msk.bf16.gmra.mxu2 %vm593_vm3, %v808_v43 }
  0xab   : > { %v2821_v51 = vpop.f32.mrf.mxu1 }
  0xad   : > { %v2823_v45 = vpop.f32.mrf.mxu2 }
  0xae   : > { %2232 = vmatmul.msk.bf16.gmra.mxu3 %vm593_vm3, %v2397_v47 }
  0xaf   : > { %v631_v53 = vpop.f32.mrf.mxu0 }
  0xb1   : > { %v2827_v22 = vpop.f32.mrf.mxu3 }
  0xb2   : > { %2269 = vmatmul.msk.bf16.gmra.mxu0 %vm593_vm3, %v1174_v54 }
  0xb3   : > { %v2831_v57 = vpop.f32.mrf.mxu1 }
  0xb5   : > { %v2836_v59 = vpop.f32.mrf.mxu2 }
  0xb6   : > { %2183 = vmatmul.msk.bf16.gmra.mxu1 %vm593_vm3, %v2383_v56 }
  0xb7   : > { %v633_v60 = vpop.f32.mrf.mxu0 }
  0xb9   : > { %v2842_v2 = vpop.f32.mrf.mxu3 }
  0xba   : > { %2192 = vmatmul.msk.bf16.gmra.mxu2 %vm593_vm3, %v810_v61  ;;  %v1614_v61 = vshrl.u32 %v2852_v16, 16 }
  0xbb   : > { %v2845_v7 = vpop.f32.mrf.mxu1 }
  0xbc   : > { %v1616_v5 = vor.u32 %v1614_v61, %v1612_v34  ;;  %v1288_v61 = vrot.slane %v2769_v3, 1 }
  0xbd   : > { %v2847_v10 = vpop.f32.mrf.mxu2 }
  0xbe   : > { %2233 = vmatmul.msk.bf16.gmra.mxu3 %vm593_vm3, %v2398_v4  ;;  %v2407_v4 = vld [vmem:[#allocation2 + $0x28] sm:$0xff] }
  0xbf   : > { %v636_v11 = vpop.f32.mrf.mxu0 }
  0xc1   : > { %v2854_v18 = vpop.f32.mrf.mxu3 }
  0xc2   : > { %2270 = vmatmul.msk.bf16.gmra.mxu0 %vm593_vm3, %v1182_v12 }
  0xc3   : > { %v747_v19 = vpop.f32.mrf.mxu1 }
  0xc4   : > { %v748_v24 = vadd.f32 %v747_v19, %v631_v53  ;;  %v2415_v53 = vld [vmem:[#allocation2 + $0x30] sm:$0xff] }
  0xc5   : > { %v2859_v29 = vpop.f32.mrf.mxu2  ;;  %v1771_v13 = vrot.slane %v2415_v53, 1 }
  0xc6   : > { %2272 = vmatmul.msk.bf16.vlgmr.msra.gmra.mxu1 %vm593_vm3, %v1283_v36 }
  0xc7   : > { %v638_v31 = vpop.f32.mrf.mxu0  ;;  %v1772_v20 = vsel %vm793_vm4, %v1769_v30, %v1771_v13 }
  0xc9   : > { %v2862_v38 = vpop.f32.mrf.mxu3 }
  0xca   : > { %2313 = vmatmul.msk.bf16.vlgmr.msra.gmra.mxu2 %vm593_vm3, %v2406_v35  ;;  %v1287_v35 = vsel %vm793_vm4, %v1284_v52, %v1286_v21 }
  0xcb   : > { %v749_v43 = vpop.f32.mrf.mxu1 }
  0xcc   : > { %v750_v44 = vadd.f32 %v749_v43, %v633_v60  ;;  %v1618_v60 = vshll.u32 %v2415_v53, 16 }
  0xcd   : > { %v847_v46 = vpop.f32.mrf.mxu2 }
  0xce   : > { %2350 = vmatmul.msk.bf16.vlgmr.msra.gmra.mxu3 %vm593_vm3, %v1613_v39  ;;  %v887_v47 = vadd.f32 %v847_v46, %v748_v24  ;;  %v1620_v6 = vrot.slane %v1618_v60, 1  ;;  %v2901_v60 = vld [vmem:[#allocation2 + $0x40] sm:$0xff] }
  0xcf   : > { %v1219_v48 = vpop.f32.mrf.mxu0 }
  0xd0   : > { %v1621_v12 = vsel %vm524_vm2, %v1616_v5, %v1620_v6  ;;  %v1634_v5 = vshll.u32 %v2901_v60, 16 }
  0xd1   : > { %v997_v54 = vpop.f32.mrf.mxu3 }
  0xd2   : > { %2359 = vmatmul.msk.bf16.vlgmr.msra.gmra.mxu0 %vm593_vm3, %v1770_v50  ;;  %v1037_v55 = vadd.f32 %v997_v54, %v887_v47  ;;  %v1773_v50 = vrot.slane %v2883_v23, 1 }
  0xd3   : > { %v752_v56 = vpop.f32.mrf.mxu1 }
  0xd4   : > { %v753_v62 = vadd.f32 %v752_v56, %v636_v11  ;;  %v2873_v63 = vadd.f32 %v1219_v48, %v1037_v55 }
  0xd5   : > { %v849_v0 = vpop.f32.mrf.mxu2 }
  0xd6   : > { %v888_v1 = vadd.f32 %v849_v0, %v750_v44  ;;  %2273 = vmatmul.msk.bf16.gmra.mxu1 %vm593_vm3, %v1285_v25  ;;  %v1628_v44 = vrot.slane %v1626_v33, 1  ;;  %v1774_v25 = vsel %vm793_vm4, %v1771_v13, %v1773_v50  ;;  %v432_v0 = vld [vmem:[%s2659_s26 + $0x14] sm:$0xf]  ;;  %v2922_v33 = vld [vmem:[#allocation2 + $0x48] sm:$0xff] }
  0xd7   : > { %v1221_v49 = vpop.f32.mrf.mxu0  ;;  %440 = vst.msk [vmem:[#allocation2 + $0x54] sm:$0xf] %vm410_vm1, %v432_v0 }
  0xd9   : > { %v999_v8 = vpop.f32.mrf.mxu3 }
  0xda   : > { %v1038_v9 = vadd.f32 %v999_v8, %v888_v1  ;;  %2314 = vmatmul.msk.bf16.gmra.mxu2 %vm593_vm3, %v2407_v4  ;;  %v1289_v4 = vsel %vm793_vm4, %v1286_v21, %v1288_v61 }
  0xdb   : > { %v754_v15 = vpop.f32.mrf.mxu1 }
  0xdc   : > { %v755_v16 = vadd.f32 %v754_v15, %v638_v31  ;;  %v2878_v11 = vadd.f32 %v1221_v49, %v1038_v9  ;;  %v1622_v31 = vshrl.u32 %v2415_v53, 16  ;;  %v1630_v49 = vshrl.u32 %v2883_v23, 16 }
  0xdd   : > { %v852_v17 = vpop.f32.mrf.mxu2 }
  0xde   : > { %2351 = vmatmul.msk.bf16.gmra.mxu3 %vm593_vm3, %v1621_v12  ;;  %v889_v19 = vadd.f32 %v852_v17, %v753_v62  ;;  %v1624_v43 = vor.u32 %v1622_v31, %v1620_v6  ;;  %v2409_v12 = vld [vmem:[#allocation2 + $0x38] sm:$0xff]  ;;  %v1632_v15 = vor.u32 %v1630_v49, %v1628_v44  ;;  %v1290_v31 = vrot.slane %v2782_v14, 1 }
  0xdf   : > { %v1224_v36 = vpop.f32.mrf.mxu0  ;;  %v1292_v49 = vrot.slane %v2800_v28, 1 }
  0xe0   : > { %v1629_v48 = vsel %vm524_vm2, %v1624_v43, %v1628_v44  ;;  %v1638_v43 = vshrl.u32 %v2901_v60, 16  ;;  %v1642_v44 = vshll.u32 %v2922_v33, 16 }
  0xe1   : > { %v1002_v24 = vpop.f32.mrf.mxu3 }
  0xe2   : > { %2360 = vmatmul.msk.bf16.gmra.mxu0 %vm593_vm3, %v1772_v20  ;;  %v1039_v26 = vadd.f32 %v1002_v24, %v889_v19 }
  0xe3   : > { %v757_v27 = vpop.f32.mrf.mxu1 }
  0xe4   : > { %v758_v34 = vadd.f32 %v757_v27, %v2811_v40  ;;  %v2889_v37 = vadd.f32 %v1224_v36, %v1039_v26 }
  0xe5   : > { %v854_v39 = vpop.f32.mrf.mxu2 }
  0xe6   : > { %v890_v42 = vadd.f32 %v854_v39, %v755_v16  ;;  %2274 = vmatmul.msk.bf16.gmra.mxu1 %vm593_vm3, %v1287_v35  ;;  %v1636_v16 = vrot.slane %v1634_v5, 1  ;;  %v433_v39 = vld [vmem:[%s2659_s26 + $0x18] sm:$0xf]  ;;  %v2944_v5 = vld [vmem:[#allocation2 + $0x50] sm:$0xff] }
  0xe7   : > { %v1226_v30 = vpop.f32.mrf.mxu0  ;;  %441 = vst.msk [vmem:[#allocation2 + $0x58] sm:$0xf] %vm410_vm1, %v433_v39 }
  0xe8   : > { %v1637_v36 = vsel %vm524_vm2, %v1632_v15, %v1636_v16  ;;  %v1650_v15 = vshll.u32 %v2944_v5, 16 }
  0xe9   : > { %v1004_v46 = vpop.f32.mrf.mxu3 }
  0xea   : > { %v1040_v47 = vadd.f32 %v1004_v46, %v890_v42  ;;  %2315 = vmatmul.msk.bf16.gmra.mxu2 %vm593_vm3, %v2408_v58  ;;  %v434_v42 = vld [vmem:[%s2659_s26 + $0x1c] sm:$0xf] }
  0xeb   : > { %v759_v40 = vpop.f32.mrf.mxu1  ;;  %442 = vst.msk [vmem:[#allocation2 + $0x5c] sm:$0xf] %vm410_vm1, %v434_v42 }
  0xec   : > { %v760_v52 = vadd.f32 %v759_v40, %v2821_v51  ;;  %v2896_v53 = vadd.f32 %v1226_v30, %v1040_v47  ;;  %v1291_v30 = vsel %vm793_vm4, %v1288_v61, %v1290_v31  ;;  %v1640_v40 = vor.u32 %v1638_v43, %v1636_v16 }
  0xed   : > { %v857_v54 = vpop.f32.mrf.mxu2 }
  0xee   : > { %2352 = vmatmul.msk.bf16.gmra.mxu3 %vm593_vm3, %v1629_v48  ;;  %v891_v55 = vadd.f32 %v857_v54, %v758_v34  ;;  %v2410_v48 = vld [vmem:[#allocation2 + $0x40] sm:$0xff] }
  0xef   : > { %v1229_v56 = vpop.f32.mrf.mxu0 }
  0xf1   : > { %v1007_v62 = vpop.f32.mrf.mxu3 }
  0xf2   : > { %2361 = vmatmul.msk.bf16.gmra.mxu0 %vm593_vm3, %v1774_v25  ;;  %v1041_v1 = vadd.f32 %v1007_v62, %v891_v55  ;;  %v1777_v25 = vrot.slane %v2922_v33, 1 }
  0xf3   : > { %v762_v51 = vpop.f32.mrf.mxu1 }
  0xf4   : > { %v763_v6 = vadd.f32 %v762_v51, %v2831_v57  ;;  %v2910_v8 = vadd.f32 %v1229_v56, %v1041_v1  ;;  %v1775_v57 = vrot.slane %v2901_v60, 1 }
  0xf5   : > { %v859_v3 = vpop.f32.mrf.mxu2 }
  0xf6   : > { %v892_v9 = vadd.f32 %v859_v3, %v760_v52  ;;  %2275 = vmatmul.msk.bf16.gmra.mxu1 %vm593_vm3, %v1289_v4  ;;  %v1776_v35 = vsel %vm793_vm4, %v1773_v50, %v1775_v57  ;;  %v1644_v52 = vrot.slane %v1642_v44, 1  ;;  %v1778_v4 = vsel %vm793_vm4, %v1775_v57, %v1777_v25 }
  0xf7   : > { %v1231_v13 = vpop.f32.mrf.mxu0 }
  0xf8   : > { %v1645_v56 = vsel %vm524_vm2, %v1640_v40, %v1644_v52 }
  0xf9   : > { %v1009_v17 = vpop.f32.mrf.mxu3 }
  0xfa   : > { %v1042_v19 = vadd.f32 %v1009_v17, %v892_v9  ;;  %2316 = vmatmul.msk.bf16.gmra.mxu2 %vm593_vm3, %v2409_v12  ;;  %v1293_v12 = vsel %vm793_vm4, %v1290_v31, %v1292_v49 }
  0xfb   : > { %v764_v20 = vpop.f32.mrf.mxu1 }
  0xfc   : > { %v765_v21 = vadd.f32 %v764_v20, %v2845_v7  ;;  %v2917_v23 = vadd.f32 %v1231_v13, %v1042_v19  ;;  %v1646_v13 = vshrl.u32 %v2922_v33, 16 }
  0xfd   : > { %v862_v24 = vpop.f32.mrf.mxu2 }
  0xfe   : > { %2353 = vmatmul.msk.bf16.gmra.mxu3 %vm593_vm3, %v1637_v36  ;;  %v893_v26 = vadd.f32 %v862_v24, %v763_v6  ;;  %v2532_v6 = vmov 0   ;;  %v2411_v36 = vld [vmem:[#allocation2 + $0x48] sm:$0xff]  ;;  %v1648_v20 = vor.u32 %v1646_v13, %v1644_v52 }
  0xff   : > { %v1234_v27 = vpop.f32.mrf.mxu0  ;;  %443 = vst.msk [vmem:[#allocation2 + $0x60] sm:$0xf] %vm410_vm1, %v2532_v6 }
 0x101   : > { %v1012_v34 = vpop.f32.mrf.mxu3 }
 0x102   : > { %2362 = vmatmul.msk.bf16.gmra.mxu0 %vm593_vm3, %v1776_v35  ;;  %v1043_v58 = vadd.f32 %v1012_v34, %v893_v26  ;;  %v1779_v35 = vrot.slane %v2944_v5, 1 }
 0x103   : > { %v767_v7 = vpop.f32.mrf.mxu1 }
 0x104   : > { %v2932_v14 = vadd.f32 %v1234_v27, %v1043_v58  ;;  %v768_v60 = vadd.f32 %v767_v7, %v2823_v45  ;;  %v1780_v58 = vsel %vm793_vm4, %v1777_v25, %v1779_v35  ;;  %v1294_v7 = vrot.slane %v2814_v41, 1  ;;  %v2412_v41 = vld [vmem:[#allocation2 + $0x50] sm:$0xff] }
 0x105   : > { %v864_v46 = vpop.f32.mrf.mxu2 }
 0x106   : > { %v894_v47 = vadd.f32 %v864_v46, %v765_v21  ;;  %2276 = vmatmul.msk.bf16.gmra.mxu1 %vm593_vm3, %v1291_v30  ;;  %v1652_v21 = vrot.slane %v1650_v15, 1  ;;  %v2964_v30 = vld [vmem:[#allocation2 + $0x58] sm:$0xff] }
 0x107   : > { %v1236_v50 = vpop.f32.mrf.mxu0 }
 0x108   : > { %v1653_v27 = vsel %vm524_vm2, %v1648_v20, %v1652_v21 }
 0x109   : > { %v1014_v54 = vpop.f32.mrf.mxu3 }
 0x10a   : > { %v1044_v55 = vadd.f32 %v1014_v54, %v894_v47  ;;  %2317 = vmatmul.msk.bf16.gmra.mxu2 %vm593_vm3, %v2410_v48  ;;  %v1654_v47 = vshrl.u32 %v2944_v5, 16  ;;  %v1658_v48 = vshll.u32 %v2964_v30, 16 }
 0x10b   : > { %v769_v61 = vpop.f32.mrf.mxu1 }
 0x10c   : > { %v2939_v62 = vadd.f32 %v1236_v50, %v1044_v55  ;;  %v770_v16 = vadd.f32 %v769_v61, %v2836_v59  ;;  %v1660_v25 = vrot.slane %v1658_v48, 1  ;;  %v1556_v61 = vld [vmem:[#allocation2 + $0x60] sm:$0x1] }
 0x10d   : > { %v867_v0 = vpop.f32.mrf.mxu2 }
 0x10e   : > { %2354 = vmatmul.msk.bf16.gmra.mxu3 %vm593_vm3, %v1645_v56  ;;  %v895_v1 = vadd.f32 %v867_v0, %v768_v60  ;;  %v1656_v56 = vor.u32 %v1654_v47, %v1652_v21 }
 0x10f   : > { %v1239_v51 = vpop.f32.mrf.mxu0 }
 0x111   : > { %v1017_v3 = vpop.f32.mrf.mxu3 }
 0x112   : > { %2363 = vmatmul.msk.bf16.gmra.mxu0 %vm593_vm3, %v1778_v4  ;;  %v1045_v45 = vadd.f32 %v1017_v3, %v895_v1  ;;  %v1661_v1 = vsel %vm524_vm2, %v1656_v56, %v1660_v25  ;;  %v1592_v4 = vunpack.c.l.b16 %v1556_v61 }
 0x113   : > { %v772_v9 = vpop.f32.mrf.mxu1 }
 0x114   : > { %v2952_v17 = vadd.f32 %v1239_v51, %v1045_v45  ;;  %v773_v59 = vadd.f32 %v772_v9, %v2847_v10  ;;  %v1295_v10 = vsel %vm793_vm4, %v1292_v49, %v1294_v7  ;;  %v1781_v51 = vrot.slane %v2964_v30, 1 }
 0x115   : > { %v869_v28 = vpop.f32.mrf.mxu2  ;;  %v1601_v13 = vpack.c.b16 %v1592_v4, %v1592_v4 }
 0x116   : > { %v896_v19 = vadd.f32 %v869_v28, %v770_v16  ;;  %2277 = vmatmul.msk.bf16.gmra.mxu1 %vm593_vm3, %v1293_v12  ;;  %v1782_v9 = vsel %vm793_vm4, %v1779_v35, %v1781_v51  ;;  %v1296_v12 = vrot.slane %v2834_v32, 1  ;;  %v2413_v32 = vld [vmem:[#allocation2 + $0x58] sm:$0xff] }
 0x117   : > { %v1241_v57 = vpop.f32.mrf.mxu0 }
 0x119   : > { %v1019_v24 = vpop.f32.mrf.mxu3 }
 0x11a   : > { %v1046_v26 = vadd.f32 %v1019_v24, %v896_v19  ;;  %2318 = vmatmul.msk.bf16.gmra.mxu2 %vm593_vm3, %v2411_v36  ;;  %v1297_v19 = vsel %vm793_vm4, %v1294_v7, %v1296_v12  ;;  %v1666_v36 = vshll.u32 %v1601_v13, 16 }
 0x11b   : > { %v774_v31 = vpop.f32.mrf.mxu1 }
 0x11c   : > { %v2959_v33 = vadd.f32 %v1241_v57, %v1046_v26  ;;  %v775_v50 = vadd.f32 %v774_v31, %v2859_v29  ;;  %v1668_v35 = vrot.slane %v1666_v36, 1 }
 0x11d   : > { %v872_v34 = vpop.f32.mrf.mxu2 }
 0x11e   : > { %2355 = vmatmul.msk.bf16.gmra.mxu3 %vm593_vm3, %v1653_v27  ;;  %v897_v39 = vadd.f32 %v872_v34, %v773_v59 }
 0x11f   : > { %v1244_v42 = vpop.f32.mrf.mxu0 }
 0x121   : > { %v1022_v43 = vpop.f32.mrf.mxu3 }
 0x122   : > { %2364 = vmatmul.msk.bf16.gmra.mxu0 %vm593_vm3, %v1780_v58  ;;  %v1047_v44 = vadd.f32 %v1022_v43, %v897_v39  ;;  %v1783_v39 = vrot.slane %v1601_v13, 1 }
 0x123   : > { %v777_v46 = vpop.f32.mrf.mxu1 }
 0x124   : > { %v2971_v40 = vadd.f32 %v1244_v42, %v1047_v44  ;;  %v778_v49 = vadd.f32 %v777_v46, %v2827_v22  ;;  %v1662_v22 = vshrl.u32 %v2964_v30, 16  ;;  %v1784_v44 = vsel %vm793_vm4, %v1781_v51, %v1783_v39 }
 0x125   : > { %v874_v52 = vpop.f32.mrf.mxu2 }
 0x126   : > { %v898_v54 = vadd.f32 %v874_v52, %v775_v50  ;;  %2278 = vmatmul.msk.bf16.gmra.mxu1 %vm593_vm3, %v1295_v10  ;;  %v1664_v27 = vor.u32 %v1662_v22, %v1660_v25 }
 0x127   : > { %v1246_v55 = vpop.f32.mrf.mxu0 }
 0x128   : > { %v1669_v34 = vsel %vm524_vm2, %v1664_v27, %v1668_v35 }
 0x129   : > { %v1024_v60 = vpop.f32.mrf.mxu3 }
 0x12a   : > { %v1048_v0 = vadd.f32 %v1024_v60, %v898_v54  ;;  %2319 = vmatmul.msk.bf16.gmra.mxu2 %vm593_vm3, %v2412_v41 }
 0x12b   : > { %v779_v29 = vpop.f32.mrf.mxu1 }
 0x12c   : > { %v2978_v5 = vadd.f32 %v1246_v55, %v1048_v0  ;;  %v780_v57 = vadd.f32 %v779_v29, %v2842_v2  ;;  %v3010_v29 = vld [vmem:[%s3098_s3] ss:$0 sm:$0xff] }
 0x12d   : > { %v877_v6 = vpop.f32.mrf.mxu2 }
 0x12e   : > { %2356 = vmatmul.msk.bf16.gmra.mxu3 %vm593_vm3, %v1661_v1  ;;  %v899_v3 = vadd.f32 %v877_v6, %v778_v49 }
 0x12f   : > { %v1249_v45 = vpop.f32.mrf.mxu0 }
 0x131   : > { %v1027_v15 = vpop.f32.mrf.mxu3 }
 0x132   : > { %2365 = vmatmul.msk.bf16.gmra.mxu0 %vm593_vm3, %v1782_v9  ;;  %v1049_v16 = vadd.f32 %v1027_v15, %v899_v3 }
 0x133   : > { %v782_v28 = vpop.f32.mrf.mxu1 }
 0x134   : > { %v2987_v20 = vadd.f32 %v1249_v45, %v1049_v16  ;;  %v783_v2 = vadd.f32 %v782_v28, %v2854_v18 }
 0x135   : > { %v879_v21 = vpop.f32.mrf.mxu2 }
 0x136   : > { %v900_v24 = vadd.f32 %v879_v21, %v780_v57  ;;  %2279 = vmatmul.msk.bf16.gmra.mxu1 %vm593_vm3, %v1297_v19 }
 0x137   : > { %v1251_v26 = vpop.f32.mrf.mxu0 }
 0x139   : > { %v1029_v31 = vpop.f32.mrf.mxu3 }
 0x13a   : > { %v1050_v59 = vadd.f32 %v1029_v31, %v900_v24  ;;  %2320 = vmatmul.msk.bf16.gmra.mxu2 %vm593_vm3, %v2413_v32 }
 0x13b   : > { %v784_v42 = vpop.f32.mrf.mxu1 }
 0x13c   : > { %v2993_v58 = vadd.f32 %v1251_v26, %v1050_v59  ;;  %v785_v48 = vadd.f32 %v784_v42, %v2862_v38 }
 0x13d   : > { %v882_v7 = vpop.f32.mrf.mxu2 }
 0x13e   : > { %2357 = vmatmul.msk.bf16.gmra.mxu3 %vm593_vm3, %v1669_v34  ;;  %v901_v30 = vadd.f32 %v882_v7, %v783_v2 }
 0x13f   : > { %v1254_v43 = vpop.f32.mrf.mxu0 }
 0x141   : > { %v1032_v46 = vpop.f32.mrf.mxu3 }
 0x142   : > { %2366 = vmatmul.msk.bf16.gmra.mxu0 %vm593_vm3, %v1784_v44  ;;  %v1051_v10 = vadd.f32 %v1032_v46, %v901_v30 }
 0x143   : > { %v1334_v47 = vpop.f32.mrf.mxu1 }
 0x144   : > { %v2999_v18 = vadd.f32 %v1254_v43, %v1051_v10  ;;  %v1374_v25 = vadd.f32 %v1334_v47, %v2873_v63 }
 0x145   : > { %v884_v50 = vpop.f32.mrf.mxu2 }
 0x146   : > { %v902_v52 = vadd.f32 %v884_v50, %v785_v48 }
 0x147   : > { %v1256_v54 = vpop.f32.mrf.mxu0 }
 0x149   : > { %v1034_v41 = vpop.f32.mrf.mxu3 }
 0x14a   : > { %v1052_v55 = vadd.f32 %v1034_v41, %v902_v52 }
 0x14b   : > { %v1336_v56 = vpop.f32.mrf.mxu1 }
 0x14c   : > { %v3003_v61 = vadd.f32 %v1256_v54, %v1052_v55  ;;  %v1375_v63 = vadd.f32 %v1336_v56, %v2878_v11 }
 0x14d   : > { %v1484_v60 = vpop.f32.mrf.mxu2 }
 0x14e   : > { %v1524_v0 = vadd.f32 %v1484_v60, %v1374_v25 }
 0x14f   : > { %v1821_v1 = vpop.f32.mrf.mxu0 }
 0x151   : > { %v1706_v38 = vpop.f32.mrf.mxu3 }
 0x152   : > { %v1746_v51 = vadd.f32 %v1706_v38, %v1524_v0 }
 0x153   : > { %v1339_v4 = vpop.f32.mrf.mxu1 }
 0x154   : > { %v1861_v49 = vadd.f32 %v1821_v1, %v1746_v51  ;;  %v1376_v28 = vadd.f32 %v1339_v4, %v2889_v37 }
 0x155   : > { %v1486_v6 = vpop.f32.mrf.mxu2 }
 0x156   : > { %v1881_v3 = vadd.f32 %v3010_v29, %v1861_v49  ;;  %v1525_v45 = vadd.f32 %v1486_v6, %v1375_v63 }
 0x157   : > { %v1823_v9 = vpop.f32.mrf.mxu0 }
 0x158   : > { %v1897_v12 = vmax.f32 %v1881_v3, 0.0 }
 0x159   : > { %v1708_v13 = vpop.f32.mrf.mxu3 }
 0x15a   : > { %1914 = vst.msk [vmem:[%s3017_s24] sm:$0xff] %vm1913_vm5, %v1897_v12  ;;  %v1747_v15 = vadd.f32 %v1708_v13, %v1525_v45 }
 0x15b   : > { %v1341_v16 = vpop.f32.mrf.mxu1 }
 0x15c   : > { %v1862_v11 = vadd.f32 %v1823_v9, %v1747_v15  ;;  %v1377_v35 = vadd.f32 %v1341_v16, %v2896_v53 }
 0x15d   : > { %v1489_v19 = vpop.f32.mrf.mxu2 }
 0x15e   : > { %v1882_v22 = vadd.f32 %v3010_v29, %v1862_v11  ;;  %v1526_v36 = vadd.f32 %v1489_v19, %v1376_v28 }
 0x15f   : > { %v1826_v57 = vpop.f32.mrf.mxu0 }
 0x160   : > { %v1898_v21 = vmax.f32 %v1882_v22, 0.0 }
 0x161   : > { %v1711_v24 = vpop.f32.mrf.mxu3 }
 0x162   : > { %1915 = vst.msk [vmem:[%s3017_s24 + $0x8] sm:$0xff] %vm1913_vm5, %v1898_v21  ;;  %v1748_v32 = vadd.f32 %v1711_v24, %v1526_v36 }
 0x163   : > { %v1344_v26 = vpop.f32.mrf.mxu1 }
 0x164   : > { %v1863_v27 = vadd.f32 %v1826_v57, %v1748_v32  ;;  %v1378_v43 = vadd.f32 %v1344_v26, %v2910_v8 }
 0x165   : > { %v1491_v31 = vpop.f32.mrf.mxu2 }
 0x166   : > { %v1883_v59 = vadd.f32 %v3010_v29, %v1863_v27  ;;  %v1527_v37 = vadd.f32 %v1491_v31, %v1377_v35 }
 0x167   : > { %v1828_v34 = vpop.f32.mrf.mxu0 }
 0x168   : > { %v1899_v39 = vmax.f32 %v1883_v59, 0.0 }
 0x169   : > { %v1713_v42 = vpop.f32.mrf.mxu3 }
 0x16a   : > { %1916 = vst.msk [vmem:[%s3017_s24 + $0x10] sm:$0xff] %vm1913_vm5, %v1899_v39  ;;  %v1749_v2 = vadd.f32 %v1713_v42, %v1527_v37 }
 0x16b   : > { %v1346_v7 = vpop.f32.mrf.mxu1 }
 0x16c   : > { %v1864_v30 = vadd.f32 %v1828_v34, %v1749_v2  ;;  %v1379_v41 = vadd.f32 %v1346_v7, %v2917_v23 }
 0x16d   : > { %v1494_v44 = vpop.f32.mrf.mxu2 }
 0x16e   : > { %v1884_v46 = vadd.f32 %v3010_v29, %v1864_v30  ;;  %v1528_v53 = vadd.f32 %v1494_v44, %v1378_v43 }
 0x16f   : > { %v1831_v10 = vpop.f32.mrf.mxu0 }
 0x170   : > { %v1900_v47 = vmax.f32 %v1884_v46, 0.0 }
 0x171   : > { %v1716_v48 = vpop.f32.mrf.mxu3 }
 0x172   : > { %1917 = vst.msk [vmem:[%s3017_s24 + $0x18] sm:$0xff] %vm1913_vm5, %v1900_v47  ;;  %v1750_v50 = vadd.f32 %v1716_v48, %v1528_v53 }
 0x173   : > { %v1349_v52 = vpop.f32.mrf.mxu1 }
 0x174   : > { %v1865_v54 = vadd.f32 %v1831_v10, %v1750_v50  ;;  %v1380_v4 = vadd.f32 %v1349_v52, %v2932_v14 }
 0x175   : > { %v1496_v55 = vpop.f32.mrf.mxu2 }
 0x176   : > { %v1885_v56 = vadd.f32 %v3010_v29, %v1865_v54  ;;  %v1529_v8 = vadd.f32 %v1496_v55, %v1379_v41 }
 0x177   : > { %v1833_v25 = vpop.f32.mrf.mxu0 }
 0x178   : > { %v1901_v60 = vmax.f32 %v1885_v56, 0.0 }
 0x179   : > { %v1718_v0 = vpop.f32.mrf.mxu3 }
 0x17a   : > { %1918 = vst.msk [vmem:[%s3017_s24 + $0x20] sm:$0xff] %vm1913_vm5, %v1901_v60  ;;  %v1751_v1 = vadd.f32 %v1718_v0, %v1529_v8 }
 0x17b   : > { %v1351_v38 = vpop.f32.mrf.mxu1 }
 0x17c   : > { %v1866_v51 = vadd.f32 %v1833_v25, %v1751_v1  ;;  %v1381_v15 = vadd.f32 %v1351_v38, %v2939_v62 }
 0x17d   : > { %v1499_v49 = vpop.f32.mrf.mxu2 }
 0x17e   : > { %v1886_v63 = vadd.f32 %v3010_v29, %v1866_v51  ;;  %v1530_v23 = vadd.f32 %v1499_v49, %v1380_v4 }
 0x17f   : > { %v1836_v6 = vpop.f32.mrf.mxu0 }
 0x180   : > { %v1902_v3 = vmax.f32 %v1886_v63, 0.0 }
 0x181   : > { %v1721_v45 = vpop.f32.mrf.mxu3 }
 0x182   : > { %1919 = vst.msk [vmem:[%s3017_s24 + $0x28] sm:$0xff] %vm1913_vm5, %v1902_v3  ;;  %v1752_v9 = vadd.f32 %v1721_v45, %v1530_v23 }
 0x183   : > { %v1354_v12 = vpop.f32.mrf.mxu1 }
 0x184   : > { %v1867_v13 = vadd.f32 %v1836_v6, %v1752_v9  ;;  %v1382_v24 = vadd.f32 %v1354_v12, %v2952_v17 }
 0x185   : > { %v1501_v16 = vpop.f32.mrf.mxu2 }
 0x186   : > { %v1887_v11 = vadd.f32 %v3010_v29, %v1867_v13  ;;  %v1531_v14 = vadd.f32 %v1501_v16, %v1381_v15 }
 0x187   : > { %v1838_v28 = vpop.f32.mrf.mxu0 }
 0x188   : > { %v1903_v19 = vmax.f32 %v1887_v11, 0.0 }
 0x189   : > { %v1723_v22 = vpop.f32.mrf.mxu3 }
 0x18a   : > { %1920 = vst.msk [vmem:[%s3017_s24 + $0x30] sm:$0xff] %vm1913_vm5, %v1903_v19  ;;  %v1753_v36 = vadd.f32 %v1723_v22, %v1531_v14 }
 0x18b   : > { %v1356_v57 = vpop.f32.mrf.mxu1 }
 0x18c   : > { %v1868_v21 = vadd.f32 %v1838_v28, %v1753_v36  ;;  %v1383_v39 = vadd.f32 %v1356_v57, %v2959_v33 }
 0x18d   : > { %v1504_v32 = vpop.f32.mrf.mxu2 }
 0x18e   : > { %v1888_v26 = vadd.f32 %v3010_v29, %v1868_v21  ;;  %v1532_v62 = vadd.f32 %v1504_v32, %v1382_v24 }
 0x18f   : > { %v1841_v27 = vpop.f32.mrf.mxu0 }
 0x190   : > { %v1904_v35 = vmax.f32 %v1888_v26, 0.0 }
 0x191   : > { %v1726_v31 = vpop.f32.mrf.mxu3 }
 0x192   : > { %1921 = vst.msk [vmem:[%s3017_s24 + $0x38] sm:$0xff] %vm1913_vm5, %v1904_v35  ;;  %v1754_v59 = vadd.f32 %v1726_v31, %v1532_v62 }
 0x193   : > { %v1359_v37 = vpop.f32.mrf.mxu1 }
 0x194   : > { %v1869_v34 = vadd.f32 %v1841_v27, %v1754_v59  ;;  %v1384_v10 = vadd.f32 %v1359_v37, %v2971_v40 }
 0x195   : > { %v1506_v42 = vpop.f32.mrf.mxu2 }
 0x196   : > { %v1889_v2 = vadd.f32 %v3010_v29, %v1869_v34  ;;  %v1533_v17 = vadd.f32 %v1506_v42, %v1383_v39 }
 0x197   : > { %v1843_v7 = vpop.f32.mrf.mxu0 }
 0x198   : > { %v1905_v30 = vmax.f32 %v1889_v2, 0.0 }
 0x199   : > { %v1728_v43 = vpop.f32.mrf.mxu3 }
 0x19a   : > { %1922 = vst.msk [vmem:[%s3017_s24 + $0x40] sm:$0xff] %vm1913_vm5, %v1905_v30  ;;  %v1755_v44 = vadd.f32 %v1728_v43, %v1533_v17 }
 0x19b   : > { %v1361_v46 = vpop.f32.mrf.mxu1 }
 0x19c   : > { %v1870_v53 = vadd.f32 %v1843_v7, %v1755_v44  ;;  %v1385_v8 = vadd.f32 %v1361_v46, %v2978_v5 }
 0x19d   : > { %v1509_v47 = vpop.f32.mrf.mxu2 }
 0x19e   : > { %v1890_v48 = vadd.f32 %v3010_v29, %v1870_v53  ;;  %v1534_v33 = vadd.f32 %v1509_v47, %v1384_v10 }
 0x19f   : > { %v1846_v50 = vpop.f32.mrf.mxu0 }
 0x1a0   : > { %v1906_v52 = vmax.f32 %v1890_v48, 0.0 }
 0x1a1   : > { %v1731_v54 = vpop.f32.mrf.mxu3 }
 0x1a2   : > { %1923 = vst.msk [vmem:[%s3017_s24 + $0x48] sm:$0xff] %vm1913_vm5, %v1906_v52  ;;  %v1756_v41 = vadd.f32 %v1731_v54, %v1534_v33 }
 0x1a3   : > { %v1364_v55 = vpop.f32.mrf.mxu1 }
 0x1a4   : > { %v1871_v56 = vadd.f32 %v1846_v50, %v1756_v41  ;;  %v1386_v49 = vadd.f32 %v1364_v55, %v2987_v20 }
 0x1a5   : > { %v1511_v25 = vpop.f32.mrf.mxu2 }
 0x1a6   : > { %v1891_v60 = vadd.f32 %v3010_v29, %v1871_v56  ;;  %v1535_v40 = vadd.f32 %v1511_v25, %v1385_v8 }
 0x1a7   : > { %v1848_v0 = vpop.f32.mrf.mxu0 }
 0x1a8   : > { %v1907_v1 = vmax.f32 %v1891_v60, 0.0 }
 0x1a9   : > { %v1733_v38 = vpop.f32.mrf.mxu3 }
 0x1aa   : > { %1924 = vst.msk [vmem:[%s3017_s24 + $0x50] sm:$0xff] %vm1913_vm5, %v1907_v1  ;;  %v1757_v51 = vadd.f32 %v1733_v38, %v1535_v40 }
 0x1ab   : > { %v1366_v63 = vpop.f32.mrf.mxu1 }
 0x1ac   : > { %v1872_v4 = vadd.f32 %v1848_v0, %v1757_v51  ;;  %v1387_v15 = vadd.f32 %v1366_v63, %v2993_v58 }
 0x1ad   : > { %v1514_v23 = vpop.f32.mrf.mxu2 }
 0x1ae   : > { %v1892_v6 = vadd.f32 %v3010_v29, %v1872_v4  ;;  %v1536_v5 = vadd.f32 %v1514_v23, %v1386_v49 }
 0x1af   : > { %v1851_v3 = vpop.f32.mrf.mxu0 }
 0x1b0   : > { %v1908_v45 = vmax.f32 %v1892_v6, 0.0 }
 0x1b1   : > { %v1736_v9 = vpop.f32.mrf.mxu3 }
 0x1b2   : > { %1925 = vst.msk [vmem:[%s3017_s24 + $0x58] sm:$0xff] %vm1913_vm5, %v1908_v45  ;;  %v1758_v12 = vadd.f32 %v1736_v9, %v1536_v5 }
 0x1b3   : > { %v1369_v20 = vpop.f32.mrf.mxu1 }
 0x1b4   : > { %v1873_v13 = vadd.f32 %v1851_v3, %v1758_v12  ;;  %v1388_v21 = vadd.f32 %v1369_v20, %v2999_v18 }
 0x1b5   : > { %v1516_v16 = vpop.f32.mrf.mxu2 }
 0x1b6   : > { %v1893_v11 = vadd.f32 %v3010_v29, %v1873_v13  ;;  %v1537_v14 = vadd.f32 %v1516_v16, %v1387_v15 }
 0x1b7   : > { %v1853_v28 = vpop.f32.mrf.mxu0 }
 0x1b8   : > { %v1909_v19 = vmax.f32 %v1893_v11, 0.0 }
 0x1b9   : > { %v1738_v22 = vpop.f32.mrf.mxu3 }
 0x1ba   : > { %1926 = vst.msk [vmem:[%s3017_s24 + $0x60] sm:$0xff] %vm1913_vm5, %v1909_v19  ;;  %v1759_v36 = vadd.f32 %v1738_v22, %v1537_v14 }
 0x1bb   : > { %v1371_v62 = vpop.f32.mrf.mxu1 }
 0x1bc   : > { %v1874_v57 = vadd.f32 %v1853_v28, %v1759_v36  ;;  %v1389_v37 = vadd.f32 %v1371_v62, %v3003_v61 }
 0x1bd   : > { %v1519_v24 = vpop.f32.mrf.mxu2 }
 0x1be   : > { %v1894_v32 = vadd.f32 %v3010_v29, %v1874_v57  ;;  %v1538_v58 = vadd.f32 %v1519_v24, %v1388_v21 }
 0x1bf   : > { %v1856_v27 = vpop.f32.mrf.mxu0 }
 0x1c0   : > { %v1910_v26 = vmax.f32 %v1894_v32, 0.0 }
 0x1c1   : > { %v1741_v35 = vpop.f32.mrf.mxu3 }
 0x1c2   : > { %1927 = vst.msk [vmem:[%s3017_s24 + $0x68] sm:$0xff] %vm1913_vm5, %v1910_v26  ;;  %v1760_v31 = vadd.f32 %v1741_v35, %v1538_v58 }
 0x1c4   : > { %v1875_v59 = vadd.f32 %v1856_v27, %v1760_v31 }
 0x1c5   : > { %v1521_v34 = vpop.f32.mrf.mxu2 }
 0x1c6   : > { %v1895_v39 = vadd.f32 %v3010_v29, %v1875_v59  ;;  %v1539_v18 = vadd.f32 %v1521_v34, %v1389_v37 }
 0x1c7   : > { %v1858_v7 = vpop.f32.mrf.mxu0 }
 0x1c8   : > { %v1911_v42 = vmax.f32 %v1895_v39, 0.0 }
 0x1c9   : > { %v1743_v2 = vpop.f32.mrf.mxu3 }
 0x1ca   : > { %1928 = vst.msk [vmem:[%s3017_s24 + $0x70] sm:$0xff] %vm1913_vm5, %v1911_v42  ;;  %v1761_v17 = vadd.f32 %v1743_v2, %v1539_v18 }
 0x1cc   : > { %v1876_v30 = vadd.f32 %v1858_v7, %v1761_v17 }
 0x1ce   : > { %v1896_v43 = vadd.f32 %v3010_v29, %v1876_v30 }
 0x1d0   : > { %v1912_v44 = vmax.f32 %v1896_v43, 0.0 }
 0x1d2   : > { %1929 = vst.msk [vmem:[%s3017_s24 + $0x78] sm:$0xff] %vm1913_vm5, %v1912_v44 }
 0x1d3 PF: > { %s14_s19 = sadd.s32 1, %s2530_s19   ;;  %s3100_s15 = smov %s2522_s17 }
 0x1d4   : > { %p11_p9 = scmp.ge.s32.totalorder %s14_s19, 10   ;;  %s3101_s16 = smov %s2526_s18 }
 0x1d5   : > { %s3102_s17 = smov %s3105_s20  ;;  %s3103_s18 = smov %s3109_s21 }
 0x1d6   :  { %13 = sbr.rel (!%p11_p9) target bundleno = 3 (0x3), region = 83 }

</bundles_post_ra>
